<compile_context>
chip_gen: v6e
topology: v6e:2x2x1
jax: 0.10.0
libtpu: 0.0.40
codegen_flags: <defaults>
</compile_context>

<pallas_src>
import numpy as np
import jax
import jax.numpy as jnp
from jax.experimental import pallas as pl
from jax.experimental.pallas import tpu as pltpu

EPS = 1e-5
_N_BIAS_ROWS = 16   # sublane rows reserved for packed (1, N) rows in the 288-wide slab


def _up8(x):
    return ((x + 7) // 8) * 8


def _layout(a_in, t_in, ah, h, to, pdim, c):
    """Static sublane offsets of every weight matrix inside the packed slabs."""
    L = {}
    L['wih'] = 0                                  # (t_in, 4H)
    L['whh'] = _up8(t_in)                         # (h, 4H)
    L['tpf'] = L['whh'] + _up8(h)                 # t_w | pf_w2 | pf_w3 along lanes
    L['aw1'] = L['tpf'] + _up8(max(h, pdim))      # (a_in, ah)
    L['aw2'] = L['aw1'] + _up8(a_in)              # (ah, ah)
    L['aw3'] = L['aw2'] + _up8(ah)                # (ah, ah)
    L['pw_rows'] = L['aw3'] + _up8(ah)
    L['w1_row'] = _N_BIAS_ROWS                    # w1_stk rows inside the 288-wide slab
    return L


def _make_kernel(d):
    B, T = d['B'], d['T']
    A_IN, T_IN = d['A_IN'], d['T_IN']
    AH, H, TO, P, C = d['AH'], d['H'], d['TO'], d['P'], d['C']
    G = 4 * H
    DA1P = (AH + 1) * P
    L = d['layout']

    def kernel(audio_ref, text_ref, pk_ref, pw_ref, out_ref):
        f32 = jnp.float32

        # ---------- unpack the bias / per-lane-constant slab (single DMA) ----------
        a_b1 = pk_ref[0:1, 0:AH]
        a_b2 = pk_ref[1:2, 0:AH]
        a_b3 = pk_ref[2:3, 0:AH]
        b_lstm = pk_ref[3:4, 0:G]          # (bih+bhh) * beta, pre-folded
        t_b = pk_ref[4:5, 0:TO]
        row0 = pk_ref[5:6, 0:DA1P]         # slab-0 offsets of post_fusion_layer_1 (+pf_b1)
        pf_b2 = pk_ref[6:7, 0:P]
        pf_b3 = pk_ref[7:8, 0:C]
        alpha = pk_ref[8:9, 0:G]           # 0.5 on sigmoid lanes, 1.0 on tanh (g) lanes
        gamma = pk_ref[9:10, 0:G]          # 0.5 on sigmoid lanes, 0.0 on tanh (g) lanes
        ones_slab0 = pk_ref[10:11, 0:DA1P]
        w1_stk = pk_ref[L['w1_row']:L['w1_row'] + TO, :]    # (TO, (AH+1)*P)

        # ---------- audio SubNet (BatchNorm folded into linear_1 by the wrapper) ----------
        a_w1 = pw_ref[L['aw1']:L['aw1'] + A_IN, 0:AH]
        a_w2 = pw_ref[L['aw2']:L['aw2'] + AH, 0:AH]
        a_w3 = pw_ref[L['aw3']:L['aw3'] + AH, 0:AH]
        y = jnp.maximum(jnp.dot(audio_ref[...], a_w1, preferred_element_type=f32) + a_b1, 0.0)
        y = jnp.maximum(jnp.dot(y, a_w2, preferred_element_type=f32) + a_b2, 0.0)
        audio_h = jnp.maximum(jnp.dot(y, a_w3, preferred_element_type=f32) + a_b3, 0.0)

        # ---------- TextSubNet: 1-layer LSTM ----------
        wih = pw_ref[L['wih']:L['wih'] + T_IN, 0:G]          # beta pre-folded
        whh = pw_ref[L['whh']:L['whh'] + H, 0:G]             # hoisted load (item 5)
        # Hoisted input projection: one (T*B, in) @ (in, 4H) matmul before the loop.
        xw = jnp.dot(text_ref[...], wih, preferred_element_type=f32) + b_lstm   # (T*B, 4H)

        # Hoist the (1,G)->(B,G) broadcasts out of the time loop (no CSE of broadcasts).
        alpha_b = jnp.broadcast_to(alpha, (B, G))
        gamma_b = jnp.broadcast_to(gamma, (B, G))

        h = jnp.zeros((B, H), f32)
        c = jnp.zeros((B, H), f32)
        # Static unroll is fine at small T (B is a multiple of 8 so the xw slices are
        # sublane-aligned).  TODO(synk): switch to lax.fori_loop(unroll=...) if T grows.
        for t in range(T):
            gates = xw[t * B:(t + 1) * B, :] + jnp.dot(h, whh, preferred_element_type=f32)
            # ONE transcendental per step: sigmoid(x) = 0.5*tanh(0.5*x)+0.5 with the
            # 0.5 scale folded into the weights; alpha/gamma select sigmoid vs tanh lanes.
            act = alpha_b * jnp.tanh(gates) + gamma_b
            # Gate layout [i | f | g | o]: a half-width lane rotation (direction-agnostic,
            # shift = 2H on a 4H-lane axis) aligns g with i -> i*g as a full-vreg product.
            ig = (act * pltpu.roll(act, shift=2 * H, axis=1))[:, 0:H]
            f_g = act[:, H:2 * H]
            o_g = act[:, 3 * H:4 * H]
            c = f_g * c + ig
            h = o_g * jnp.tanh(c)

        t_w = pw_ref[L['tpf']:L['tpf'] + H, 0:TO]
        text_h = jnp.dot(h, t_w, preferred_element_type=f32) + t_b              # (B, TO)

        # ---------- tensor fusion + post-fusion MLP ----------
        # post_fusion_layer_1 was decomposed in the wrapper:
        #   z[b, k*P+p] = sum_j t_ext[b,j] * W[k, j, p]   (+ pf_b1 folded into slab 0)
        z = jnp.dot(text_h, w1_stk, preferred_element_type=f32) + row0          # (B, (AH+1)*P)

        # Broadcast a_ext = [1, audio_h] across its slab with a tiny constant 0/1 matmul,
        # then reduce the slabs with a second constant matmul (no per-slab scalar loop,
        # no lane broadcasts).  Constants are built from iotas; P is a power of two.
        e_row = jax.lax.broadcasted_iota(jnp.int32, (AH, DA1P), 0)
        e_col = jax.lax.broadcasted_iota(jnp.int32, (AH, DA1P), 1)
        e_mat = jnp.where((e_col >= (e_row + 1) * P) & (e_col < (e_row + 2) * P), 1.0, 0.0)
        a_bc = jnp.dot(audio_h, e_mat, preferred_element_type=f32) + ones_slab0  # (B, (AH+1)*P)

        r_row = jax.lax.broadcasted_iota(jnp.int32, (DA1P, P), 0)
        r_col = jax.lax.broadcasted_iota(jnp.int32, (DA1P, P), 1)
        r_mat = jnp.where((r_row % P) == r_col, 1.0, 0.0)
        y1 = jnp.maximum(jnp.dot(a_bc * z, r_mat, preferred_element_type=f32), 0.0)

        pf_w2 = pw_ref[L['tpf']:L['tpf'] + P, TO:TO + P]
        pf_w3 = pw_ref[L['tpf']:L['tpf'] + P, TO + P:TO + P + C]
        y2 = jnp.maximum(jnp.dot(y1, pf_w2, preferred_element_type=f32) + pf_b2, 0.0)
        out_ref[...] = jnp.dot(y2, pf_w3, preferred_element_type=f32) + pf_b3

    return kernel


def _prepare_args(audio_x, text_x, pr):
    """Wrapper-side (traced) folding + packing of parameters into lane-dense slabs."""
    f32 = jnp.float32
    B, T, t_in = text_x.shape
    a_in = audio_x.shape[1]
    ah = pr['a_b1'].shape[1]
    h = pr['whh'].shape[0]
    to = pr['t_b'].shape[1]
    P = pr['pf_b1'].shape[1]
    c = pr['pf_b3'].shape[1]
    g = 4 * h
    da1, dt1 = ah + 1, to + 1
    da1p = da1 * P
    L = _layout(a_in, t_in, ah, h, to, P, c)

    # (1) Fold BatchNorm (eval) into the first audio Linear.
    scale = pr['bn_g'] * jax.lax.rsqrt(pr['bn_v'] + EPS)                # (1, a_in)
    a_w1f = pr['a_w1'] * scale.T                                        # (a_in, ah)
    a_b1f = pr['a_b1'] + (pr['bn_b'] - pr['bn_m'] * scale) @ pr['a_w1']

    # (2) Single-transcendental gates: sigmoid(x) = 0.5*tanh(0.5*x)+0.5.  The 0.5
    #     input scale (beta) is folded into wih/whh/bias; alpha/gamma stay as rows.
    lane = jnp.arange(g)
    is_g = (lane >= 2 * h) & (lane < 3 * h)                             # tanh ("g") lanes
    beta = jnp.where(is_g, 1.0, 0.5)[None, :].astype(f32)
    alpha = jnp.where(is_g, 1.0, 0.5)[None, :].astype(f32)
    gamma = jnp.where(is_g, 0.0, 0.5)[None, :].astype(f32)
    wih_s = pr['wih'] * beta
    whh_s = pr['whh'] * beta
    b_lstm = (pr['bih'] + pr['bhh']) * beta

    # (3) Decompose post_fusion_layer_1: no concat-with-ones, one in-kernel matmul.
    W_r = pr['pf_w1t'].reshape(da1, dt1, P)
    row0 = W_r[:, 0, :].reshape(1, da1p)
    row0 = row0 + jnp.pad(pr['pf_b1'], ((0, 0), (0, da1p - P)))         # fold pf_b1 into slab 0
    w1_stk = jnp.transpose(W_r[:, 1:, :], (1, 0, 2)).reshape(to, da1p)  # (TO, (AH+1)*P)
    ones_slab0 = jnp.pad(jnp.ones((1, P), f32), ((0, 0), (0, da1p - P)))

    # (4) Pack every (1, N) row + alpha/gamma + w1_stk into ONE slab -> one DMA.
    wpk = max(da1p, g)
    pk = jnp.zeros((_N_BIAS_ROWS + to, wpk), f32)

    def setrow(a, i, r):
        return a.at[i:i + 1, 0:r.shape[1]].set(r)

    pk = setrow(pk, 0, a_b1f)
    pk = setrow(pk, 1, pr['a_b2'])
    pk = setrow(pk, 2, pr['a_b3'])
    pk = setrow(pk, 3, b_lstm)
    pk = setrow(pk, 4, pr['t_b'])
    pk = setrow(pk, 5, row0)
    pk = setrow(pk, 6, pr['pf_b2'])
    pk = setrow(pk, 7, pr['pf_b3'])
    pk = setrow(pk, 8, alpha)
    pk = setrow(pk, 9, gamma)
    pk = setrow(pk, 10, ones_slab0)
    pk = pk.at[_N_BIAS_ROWS:_N_BIAS_ROWS + to, 0:da1p].set(w1_stk)

    # (5) Pack all remaining weight matrices into one 128-lane-wide slab -> one DMA.
    wl = max(g, to + P + c, ah)
    pw = jnp.zeros((L['pw_rows'], wl), f32)
    pw = pw.at[L['wih']:L['wih'] + t_in, 0:g].set(wih_s)
    pw = pw.at[L['whh']:L['whh'] + h, 0:g].set(whh_s)
    pw = pw.at[L['tpf']:L['tpf'] + h, 0:to].set(pr['t_w'])
    pw = pw.at[L['tpf']:L['tpf'] + P, to:to + P].set(pr['pf_w2'])
    pw = pw.at[L['tpf']:L['tpf'] + P, to + P:to + P + c].set(pr['pf_w3'])
    pw = pw.at[L['aw1']:L['aw1'] + a_in, 0:ah].set(a_w1f)
    pw = pw.at[L['aw2']:L['aw2'] + ah, 0:ah].set(pr['a_w2'])
    pw = pw.at[L['aw3']:L['aw3'] + ah, 0:ah].set(pr['a_w3'])

    # Time-major text flattened to (T*B, text_in): the LSTM input projection is
    # ONE matmul in-kernel, sliced per step.
    text_flat = jnp.transpose(text_x, (1, 0, 2)).reshape(T * B, t_in)

    dims = dict(B=B, T=T, A_IN=a_in, T_IN=t_in, AH=ah, H=h, TO=to, P=P, C=c, layout=L)
    return (audio_x, text_flat, pk, pw), dims


def tfn_forward(audio_x, text_x, params):
    args, dims = _prepare_args(audio_x, text_x, params)
    kernel = _make_kernel(dims)
    return pl.pallas_call(
        kernel,
        out_shape=jax.ShapeDtypeStruct((dims['B'], dims['C']), jnp.float32),
        in_specs=[pl.BlockSpec(memory_space=pltpu.MemorySpace.VMEM)] * len(args),
        out_specs=pl.BlockSpec(memory_space=pltpu.MemorySpace.VMEM),
    )(*args)


def tfn_reference(audio_x, text_x, p):
    """Pure-JAX reference with the original (unfused) math, for a sanity check."""
    normed = (audio_x - p['bn_m']) * jax.lax.rsqrt(p['bn_v'] + EPS) * p['bn_g'] + p['bn_b']
    y = jax.nn.relu(normed @ p['a_w1'] + p['a_b1'])
    y = jax.nn.relu(y @ p['a_w2'] + p['a_b2'])
    audio_h = jax.nn.relu(y @ p['a_w3'] + p['a_b3'])

    B, T, _ = text_x.shape
    H = p['whh'].shape[0]
    h = jnp.zeros((B, H), jnp.float32)
    c = jnp.zeros((B, H), jnp.float32)
    for t in range(T):
        g = text_x[:, t, :] @ p['wih'] + p['bih'] + h @ p['whh'] + p['bhh']
        i_g = jax.nn.sigmoid(g[:, 0 * H:1 * H])
        f_g = jax.nn.sigmoid(g[:, 1 * H:2 * H])
        g_g = jnp.tanh(g[:, 2 * H:3 * H])
        o_g = jax.nn.sigmoid(g[:, 3 * H:4 * H])
        c = f_g * c + i_g * g_g
        h = o_g * jnp.tanh(c)
    text_h = h @ p['t_w'] + p['t_b']

    ones = jnp.ones((B, 1), jnp.float32)
    a_ext = jnp.concatenate([ones, audio_h], axis=1)
    t_ext = jnp.concatenate([ones, text_h], axis=1)
    fusion = (a_ext[:, :, None] * t_ext[:, None, :]).reshape(B, -1)
    y1 = jax.nn.relu(fusion @ p['pf_w1t'] + p['pf_b1'])
    y2 = jax.nn.relu(y1 @ p['pf_w2'] + p['pf_b2'])
    return y2 @ p['pf_w3'] + p['pf_b3']


def make_params(key, cfg):
    a_in, t_in = cfg['audio_in'], cfg['text_in']
    a_h, t_h = cfg['audio_hidden'], cfg['text_hidden']
    t_out, P, C = cfg['text_out'], cfg['post_fusion_dim'], cfg['num_classes']
    da1, dt1 = a_h + 1, t_out + 1

    ks = jax.random.split(key, 12)

    def lin(k, fin, fout):
        return (jax.random.uniform(k, (fin, fout), jnp.float32, -1.0, 1.0)
                * (1.0 / np.sqrt(fin))).astype(jnp.float32)

    p = {
        'bn_g': jax.random.uniform(ks[0], (1, a_in), jnp.float32, 0.5, 1.5),
        'bn_b': jnp.zeros((1, a_in), jnp.float32),
        'bn_m': jnp.zeros((1, a_in), jnp.float32),
        'bn_v': jnp.ones((1, a_in), jnp.float32),
        'a_w1': lin(ks[1], a_in, a_h), 'a_b1': jnp.zeros((1, a_h), jnp.float32),
        'a_w2': lin(ks[2], a_h, a_h),  'a_b2': jnp.zeros((1, a_h), jnp.float32),
        'a_w3': lin(ks[3], a_h, a_h),  'a_b3': jnp.zeros((1, a_h), jnp.float32),
        'wih': lin(ks[4], t_in, 4 * t_h), 'bih': jnp.zeros((1, 4 * t_h), jnp.float32),
        'whh': lin(ks[5], t_h, 4 * t_h),  'bhh': jnp.zeros((1, 4 * t_h), jnp.float32),
        't_w': lin(ks[6], t_h, t_out), 't_b': jnp.zeros((1, t_out), jnp.float32),
        'pf_w1t': lin(ks[7], da1 * dt1, P), 'pf_b1': jnp.zeros((1, P), jnp.float32),
        'pf_w2': lin(ks[8], P, P),          'pf_b2': jnp.zeros((1, P), jnp.float32),
        'pf_w3': lin(ks[9], P, C),          'pf_b3': jnp.zeros((1, C), jnp.float32),
    }
    return p


if __name__ == "__main__":
    cfg = dict(batch=8, seq=8, audio_in=16, text_in=20,
               audio_hidden=8, text_hidden=32, text_out=32,
               post_fusion_dim=32, num_classes=3)

    key = jax.random.PRNGKey(0)
    k_a, k_t, k_p = jax.random.split(key, 3)
    audio_x = jax.random.normal(k_a, (cfg['batch'], cfg['audio_in']), jnp.float32)
    text_x = jax.random.normal(k_t, (cfg['batch'], cfg['seq'], cfg['text_in']), jnp.float32)
    params = make_params(k_p, cfg)

    out = jax.jit(tfn_forward)(audio_x, text_x, params)
    out = jax.block_until_ready(out)

    ref = tfn_reference(audio_x, text_x, params)
    assert out.shape == (cfg['batch'], cfg['num_classes'])
    if not np.allclose(np.asarray(out), np.asarray(ref), rtol=2e-2, atol=2e-2):
        raise AssertionError("Pallas TFN output does not match JAX reference")

    print("KERNEL_OK")
</pallas_src>

<mosaic_0001>
module attributes {stable_mosaic.version = 11 : i64} {
  func.func @kernel(%arg0: memref<8x16xf32, #tpu.memory_space<vmem>>, %arg1: memref<64x20xf32, #tpu.memory_space<vmem>>, %arg2: memref<48x288xf32, #tpu.memory_space<vmem>>, %arg3: memref<120x128xf32, #tpu.memory_space<vmem>>, %arg4: memref<8x3xf32, #tpu.memory_space<vmem>>) attributes {dimension_semantics = [], scalar_prefetch = 0 : i64, scratch_operands = 0 : i64, tpu.core_type = #tpu.core_type<tc>} {
    %c0 = arith.constant 0 : index
    %c0_0 = arith.constant 0 : index
    %0 = vector.load %arg2[%c0, %c0_0] : memref<48x288xf32, #tpu.memory_space<vmem>>, vector<1x8xf32>
    %c1 = arith.constant 1 : index
    %c0_1 = arith.constant 0 : index
    %1 = vector.load %arg2[%c1, %c0_1] : memref<48x288xf32, #tpu.memory_space<vmem>>, vector<1x8xf32>
    %c2 = arith.constant 2 : index
    %c0_2 = arith.constant 0 : index
    %2 = vector.load %arg2[%c2, %c0_2] : memref<48x288xf32, #tpu.memory_space<vmem>>, vector<1x8xf32>
    %c3 = arith.constant 3 : index
    %c0_3 = arith.constant 0 : index
    %3 = vector.load %arg2[%c3, %c0_3] : memref<48x288xf32, #tpu.memory_space<vmem>>, vector<1x128xf32>
    %c4 = arith.constant 4 : index
    %c0_4 = arith.constant 0 : index
    %4 = vector.load %arg2[%c4, %c0_4] : memref<48x288xf32, #tpu.memory_space<vmem>>, vector<1x32xf32>
    %c5 = arith.constant 5 : index
    %c0_5 = arith.constant 0 : index
    %5 = vector.load %arg2[%c5, %c0_5] : memref<48x288xf32, #tpu.memory_space<vmem>>, vector<1x288xf32>
    %c6 = arith.constant 6 : index
    %c0_6 = arith.constant 0 : index
    %6 = vector.load %arg2[%c6, %c0_6] : memref<48x288xf32, #tpu.memory_space<vmem>>, vector<1x32xf32>
    %c7 = arith.constant 7 : index
    %c0_7 = arith.constant 0 : index
    %7 = vector.load %arg2[%c7, %c0_7] : memref<48x288xf32, #tpu.memory_space<vmem>>, vector<1x3xf32>
    %c8 = arith.constant 8 : index
    %c0_8 = arith.constant 0 : index
    %8 = vector.load %arg2[%c8, %c0_8] : memref<48x288xf32, #tpu.memory_space<vmem>>, vector<1x128xf32>
    %c9 = arith.constant 9 : index
    %c0_9 = arith.constant 0 : index
    %9 = vector.load %arg2[%c9, %c0_9] : memref<48x288xf32, #tpu.memory_space<vmem>>, vector<1x128xf32>
    %c10 = arith.constant 10 : index
    %c0_10 = arith.constant 0 : index
    %10 = vector.load %arg2[%c10, %c0_10] : memref<48x288xf32, #tpu.memory_space<vmem>>, vector<1x288xf32>
    %c16 = arith.constant 16 : index
    %c0_11 = arith.constant 0 : index
    %11 = vector.load %arg2[%c16, %c0_11] : memref<48x288xf32, #tpu.memory_space<vmem>>, vector<32x288xf32>
    %c88 = arith.constant 88 : index
    %c0_12 = arith.constant 0 : index
    %12 = vector.load %arg3[%c88, %c0_12] : memref<120x128xf32, #tpu.memory_space<vmem>>, vector<16x8xf32>
    %c104 = arith.constant 104 : index
    %c0_13 = arith.constant 0 : index
    %13 = vector.load %arg3[%c104, %c0_13] : memref<120x128xf32, #tpu.memory_space<vmem>>, vector<8x8xf32>
    %c112 = arith.constant 112 : index
    %c0_14 = arith.constant 0 : index
    %14 = vector.load %arg3[%c112, %c0_14] : memref<120x128xf32, #tpu.memory_space<vmem>>, vector<8x8xf32>
    %c0_15 = arith.constant 0 : index
    %c0_16 = arith.constant 0 : index
    %15 = vector.load %arg0[%c0_15, %c0_16] : memref<8x16xf32, #tpu.memory_space<vmem>>, vector<8x16xf32>
    %cst = arith.constant dense<0.000000e+00> : vector<8x8xf32>
    %16 = tpu.matmul %15, %12, %cst {dimension_numbers = #tpu.dot_dimension_numbers<[1], [0], [0], [1], [0, 0, 1, 1], [], []>} : vector<8x16xf32>, vector<16x8xf32>, vector<8x8xf32> -> vector<8x8xf32>
    %17 = vector.broadcast %0 : vector<1x8xf32> to vector<8x8xf32>
    %18 = arith.addf %16, %17 : vector<8x8xf32>
    %cst_17 = arith.constant 0.000000e+00 : f32
    %19 = vector.broadcast %cst_17 : f32 to vector<8x8xf32>
    %20 = arith.maximumf %18, %19 : vector<8x8xf32>
    %cst_18 = arith.constant dense<0.000000e+00> : vector<8x8xf32>
    %21 = tpu.matmul %20, %13, %cst_18 {dimension_numbers = #tpu.dot_dimension_numbers<[1], [0], [0], [1], [0, 0, 1, 1], [], []>} : vector<8x8xf32>, vector<8x8xf32>, vector<8x8xf32> -> vector<8x8xf32>
    %22 = vector.broadcast %1 : vector<1x8xf32> to vector<8x8xf32>
    %23 = arith.addf %21, %22 : vector<8x8xf32>
    %cst_19 = arith.constant 0.000000e+00 : f32
    %24 = vector.broadcast %cst_19 : f32 to vector<8x8xf32>
    %25 = arith.maximumf %23, %24 : vector<8x8xf32>
    %cst_20 = arith.constant dense<0.000000e+00> : vector<8x8xf32>
    %26 = tpu.matmul %25, %14, %cst_20 {dimension_numbers = #tpu.dot_dimension_numbers<[1], [0], [0], [1], [0, 0, 1, 1], [], []>} : vector<8x8xf32>, vector<8x8xf32>, vector<8x8xf32> -> vector<8x8xf32>
    %27 = vector.broadcast %2 : vector<1x8xf32> to vector<8x8xf32>
    %28 = arith.addf %26, %27 : vector<8x8xf32>
    %cst_21 = arith.constant 0.000000e+00 : f32
    %29 = vector.broadcast %cst_21 : f32 to vector<8x8xf32>
    %30 = arith.maximumf %28, %29 : vector<8x8xf32>
    %c0_22 = arith.constant 0 : index
    %c0_23 = arith.constant 0 : index
    %31 = vector.load %arg3[%c0_22, %c0_23] : memref<120x128xf32, #tpu.memory_space<vmem>>, vector<20x128xf32>
    %c24 = arith.constant 24 : index
    %c0_24 = arith.constant 0 : index
    %32 = vector.load %arg3[%c24, %c0_24] : memref<120x128xf32, #tpu.memory_space<vmem>>, vector<32x128xf32>
    %c0_25 = arith.constant 0 : index
    %c0_26 = arith.constant 0 : index
    %33 = vector.load %arg1[%c0_25, %c0_26] : memref<64x20xf32, #tpu.memory_space<vmem>>, vector<64x20xf32>
    %cst_27 = arith.constant dense<0.000000e+00> : vector<64x128xf32>
    %34 = tpu.matmul %33, %31, %cst_27 {dimension_numbers = #tpu.dot_dimension_numbers<[1], [0], [0], [1], [0, 0, 1, 1], [], []>} : vector<64x20xf32>, vector<20x128xf32>, vector<64x128xf32> -> vector<64x128xf32>
    %35 = vector.broadcast %3 : vector<1x128xf32> to vector<64x128xf32>
    %36 = arith.addf %34, %35 : vector<64x128xf32>
    %37 = vector.shape_cast %8 : vector<1x128xf32> to vector<1x128xf32>
    %38 = vector.broadcast %37 : vector<1x128xf32> to vector<8x128xf32>
    %39 = vector.shape_cast %9 : vector<1x128xf32> to vector<1x128xf32>
    %40 = vector.broadcast %39 : vector<1x128xf32> to vector<8x128xf32>
    %cst_28 = arith.constant 0.000000e+00 : f32
    %41 = vector.broadcast %cst_28 : f32 to vector<8x32xf32>
    %cst_29 = arith.constant 0.000000e+00 : f32
    %42 = vector.broadcast %cst_29 : f32 to vector<8x32xf32>
    %43 = vector.extract_strided_slice %36 {offsets = [0, 0], sizes = [8, 128], strides = [1, 1]} : vector<64x128xf32> to vector<8x128xf32>
    %cst_30 = arith.constant dense<0.000000e+00> : vector<8x128xf32>
    %44 = tpu.matmul %41, %32, %cst_30 {dimension_numbers = #tpu.dot_dimension_numbers<[1], [0], [0], [1], [0, 0, 1, 1], [], []>} : vector<8x32xf32>, vector<32x128xf32>, vector<8x128xf32> -> vector<8x128xf32>
    %45 = arith.addf %43, %44 : vector<8x128xf32>
    %46 = math.tanh %45 : vector<8x128xf32>
    %47 = arith.mulf %38, %46 : vector<8x128xf32>
    %48 = arith.addf %47, %40 : vector<8x128xf32>
    %c64_i32 = arith.constant 64 : i32
    %49 = tpu.dynamic_rotate %48 by %c64_i32 dim 1 : vector<8x128xf32>, i32 -> vector<8x128xf32>
    %50 = arith.mulf %48, %49 : vector<8x128xf32>
    %51 = vector.extract_strided_slice %50 {offsets = [0, 0], sizes = [8, 32], strides = [1, 1]} : vector<8x128xf32> to vector<8x32xf32>
    %52 = vector.extract_strided_slice %48 {offsets = [0, 32], sizes = [8, 32], strides = [1, 1]} : vector<8x128xf32> to vector<8x32xf32>
    %53 = vector.extract_strided_slice %48 {offsets = [0, 96], sizes = [8, 32], strides = [1, 1]} : vector<8x128xf32> to vector<8x32xf32>
    %54 = arith.mulf %52, %42 : vector<8x32xf32>
    %55 = arith.addf %54, %51 : vector<8x32xf32>
    %56 = math.tanh %55 : vector<8x32xf32>
    %57 = arith.mulf %53, %56 : vector<8x32xf32>
    %58 = vector.extract_strided_slice %36 {offsets = [8, 0], sizes = [8, 128], strides = [1, 1]} : vector<64x128xf32> to vector<8x128xf32>
    %cst_31 = arith.constant dense<0.000000e+00> : vector<8x128xf32>
    %59 = tpu.matmul %57, %32, %cst_31 {dimension_numbers = #tpu.dot_dimension_numbers<[1], [0], [0], [1], [0, 0, 1, 1], [], []>} : vector<8x32xf32>, vector<32x128xf32>, vector<8x128xf32> -> vector<8x128xf32>
    %60 = arith.addf %58, %59 : vector<8x128xf32>
    %61 = math.tanh %60 : vector<8x128xf32>
    %62 = arith.mulf %38, %61 : vector<8x128xf32>
    %63 = arith.addf %62, %40 : vector<8x128xf32>
    %c64_i32_32 = arith.constant 64 : i32
    %64 = tpu.dynamic_rotate %63 by %c64_i32_32 dim 1 : vector<8x128xf32>, i32 -> vector<8x128xf32>
    %65 = arith.mulf %63, %64 : vector<8x128xf32>
    %66 = vector.extract_strided_slice %65 {offsets = [0, 0], sizes = [8, 32], strides = [1, 1]} : vector<8x128xf32> to vector<8x32xf32>
    %67 = vector.extract_strided_slice %63 {offsets = [0, 32], sizes = [8, 32], strides = [1, 1]} : vector<8x128xf32> to vector<8x32xf32>
    %68 = vector.extract_strided_slice %63 {offsets = [0, 96], sizes = [8, 32], strides = [1, 1]} : vector<8x128xf32> to vector<8x32xf32>
    %69 = arith.mulf %67, %55 : vector<8x32xf32>
    %70 = arith.addf %69, %66 : vector<8x32xf32>
    %71 = math.tanh %70 : vector<8x32xf32>
    %72 = arith.mulf %68, %71 : vector<8x32xf32>
    %73 = vector.extract_strided_slice %36 {offsets = [16, 0], sizes = [8, 128], strides = [1, 1]} : vector<64x128xf32> to vector<8x128xf32>
    %cst_33 = arith.constant dense<0.000000e+00> : vector<8x128xf32>
    %74 = tpu.matmul %72, %32, %cst_33 {dimension_numbers = #tpu.dot_dimension_numbers<[1], [0], [0], [1], [0, 0, 1, 1], [], []>} : vector<8x32xf32>, vector<32x128xf32>, vector<8x128xf32> -> vector<8x128xf32>
    %75 = arith.addf %73, %74 : vector<8x128xf32>
    %76 = math.tanh %75 : vector<8x128xf32>
    %77 = arith.mulf %38, %76 : vector<8x128xf32>
    %78 = arith.addf %77, %40 : vector<8x128xf32>
    %c64_i32_34 = arith.constant 64 : i32
    %79 = tpu.dynamic_rotate %78 by %c64_i32_34 dim 1 : vector<8x128xf32>, i32 -> vector<8x128xf32>
    %80 = arith.mulf %78, %79 : vector<8x128xf32>
    %81 = vector.extract_strided_slice %80 {offsets = [0, 0], sizes = [8, 32], strides = [1, 1]} : vector<8x128xf32> to vector<8x32xf32>
    %82 = vector.extract_strided_slice %78 {offsets = [0, 32], sizes = [8, 32], strides = [1, 1]} : vector<8x128xf32> to vector<8x32xf32>
    %83 = vector.extract_strided_slice %78 {offsets = [0, 96], sizes = [8, 32], strides = [1, 1]} : vector<8x128xf32> to vector<8x32xf32>
    %84 = arith.mulf %82, %70 : vector<8x32xf32>
    %85 = arith.addf %84, %81 : vector<8x32xf32>
    %86 = math.tanh %85 : vector<8x32xf32>
    %87 = arith.mulf %83, %86 : vector<8x32xf32>
    %88 = vector.extract_strided_slice %36 {offsets = [24, 0], sizes = [8, 128], strides = [1, 1]} : vector<64x128xf32> to vector<8x128xf32>
    %cst_35 = arith.constant dense<0.000000e+00> : vector<8x128xf32>
    %89 = tpu.matmul %87, %32, %cst_35 {dimension_numbers = #tpu.dot_dimension_numbers<[1], [0], [0], [1], [0, 0, 1, 1], [], []>} : vector<8x32xf32>, vector<32x128xf32>, vector<8x128xf32> -> vector<8x128xf32>
    %90 = arith.addf %88, %89 : vector<8x128xf32>
    %91 = math.tanh %90 : vector<8x128xf32>
    %92 = arith.mulf %38, %91 : vector<8x128xf32>
    %93 = arith.addf %92, %40 : vector<8x128xf32>
    %c64_i32_36 = arith.constant 64 : i32
    %94 = tpu.dynamic_rotate %93 by %c64_i32_36 dim 1 : vector<8x128xf32>, i32 -> vector<8x128xf32>
    %95 = arith.mulf %93, %94 : vector<8x128xf32>
    %96 = vector.extract_strided_slice %95 {offsets = [0, 0], sizes = [8, 32], strides = [1, 1]} : vector<8x128xf32> to vector<8x32xf32>
    %97 = vector.extract_strided_slice %93 {offsets = [0, 32], sizes = [8, 32], strides = [1, 1]} : vector<8x128xf32> to vector<8x32xf32>
    %98 = vector.extract_strided_slice %93 {offsets = [0, 96], sizes = [8, 32], strides = [1, 1]} : vector<8x128xf32> to vector<8x32xf32>
    %99 = arith.mulf %97, %85 : vector<8x32xf32>
    %100 = arith.addf %99, %96 : vector<8x32xf32>
    %101 = math.tanh %100 : vector<8x32xf32>
    %102 = arith.mulf %98, %101 : vector<8x32xf32>
    %103 = vector.extract_strided_slice %36 {offsets = [32, 0], sizes = [8, 128], strides = [1, 1]} : vector<64x128xf32> to vector<8x128xf32>
    %cst_37 = arith.constant dense<0.000000e+00> : vector<8x128xf32>
    %104 = tpu.matmul %102, %32, %cst_37 {dimension_numbers = #tpu.dot_dimension_numbers<[1], [0], [0], [1], [0, 0, 1, 1], [], []>} : vector<8x32xf32>, vector<32x128xf32>, vector<8x128xf32> -> vector<8x128xf32>
    %105 = arith.addf %103, %104 : vector<8x128xf32>
    %106 = math.tanh %105 : vector<8x128xf32>
    %107 = arith.mulf %38, %106 : vector<8x128xf32>
    %108 = arith.addf %107, %40 : vector<8x128xf32>
    %c64_i32_38 = arith.constant 64 : i32
    %109 = tpu.dynamic_rotate %108 by %c64_i32_38 dim 1 : vector<8x128xf32>, i32 -> vector<8x128xf32>
    %110 = arith.mulf %108, %109 : vector<8x128xf32>
    %111 = vector.extract_strided_slice %110 {offsets = [0, 0], sizes = [8, 32], strides = [1, 1]} : vector<8x128xf32> to vector<8x32xf32>
    %112 = vector.extract_strided_slice %108 {offsets = [0, 32], sizes = [8, 32], strides = [1, 1]} : vector<8x128xf32> to vector<8x32xf32>
    %113 = vector.extract_strided_slice %108 {offsets = [0, 96], sizes = [8, 32], strides = [1, 1]} : vector<8x128xf32> to vector<8x32xf32>
    %114 = arith.mulf %112, %100 : vector<8x32xf32>
    %115 = arith.addf %114, %111 : vector<8x32xf32>
    %116 = math.tanh %115 : vector<8x32xf32>
    %117 = arith.mulf %113, %116 : vector<8x32xf32>
    %118 = vector.extract_strided_slice %36 {offsets = [40, 0], sizes = [8, 128], strides = [1, 1]} : vector<64x128xf32> to vector<8x128xf32>
    %cst_39 = arith.constant dense<0.000000e+00> : vector<8x128xf32>
    %119 = tpu.matmul %117, %32, %cst_39 {dimension_numbers = #tpu.dot_dimension_numbers<[1], [0], [0], [1], [0, 0, 1, 1], [], []>} : vector<8x32xf32>, vector<32x128xf32>, vector<8x128xf32> -> vector<8x128xf32>
    %120 = arith.addf %118, %119 : vector<8x128xf32>
    %121 = math.tanh %120 : vector<8x128xf32>
    %122 = arith.mulf %38, %121 : vector<8x128xf32>
    %123 = arith.addf %122, %40 : vector<8x128xf32>
    %c64_i32_40 = arith.constant 64 : i32
    %124 = tpu.dynamic_rotate %123 by %c64_i32_40 dim 1 : vector<8x128xf32>, i32 -> vector<8x128xf32>
    %125 = arith.mulf %123, %124 : vector<8x128xf32>
    %126 = vector.extract_strided_slice %125 {offsets = [0, 0], sizes = [8, 32], strides = [1, 1]} : vector<8x128xf32> to vector<8x32xf32>
    %127 = vector.extract_strided_slice %123 {offsets = [0, 32], sizes = [8, 32], strides = [1, 1]} : vector<8x128xf32> to vector<8x32xf32>
    %128 = vector.extract_strided_slice %123 {offsets = [0, 96], sizes = [8, 32], strides = [1, 1]} : vector<8x128xf32> to vector<8x32xf32>
    %129 = arith.mulf %127, %115 : vector<8x32xf32>
    %130 = arith.addf %129, %126 : vector<8x32xf32>
    %131 = math.tanh %130 : vector<8x32xf32>
    %132 = arith.mulf %128, %131 : vector<8x32xf32>
    %133 = vector.extract_strided_slice %36 {offsets = [48, 0], sizes = [8, 128], strides = [1, 1]} : vector<64x128xf32> to vector<8x128xf32>
    %cst_41 = arith.constant dense<0.000000e+00> : vector<8x128xf32>
    %134 = tpu.matmul %132, %32, %cst_41 {dimension_numbers = #tpu.dot_dimension_numbers<[1], [0], [0], [1], [0, 0, 1, 1], [], []>} : vector<8x32xf32>, vector<32x128xf32>, vector<8x128xf32> -> vector<8x128xf32>
    %135 = arith.addf %133, %134 : vector<8x128xf32>
    %136 = math.tanh %135 : vector<8x128xf32>
    %137 = arith.mulf %38, %136 : vector<8x128xf32>
    %138 = arith.addf %137, %40 : vector<8x128xf32>
    %c64_i32_42 = arith.constant 64 : i32
    %139 = tpu.dynamic_rotate %138 by %c64_i32_42 dim 1 : vector<8x128xf32>, i32 -> vector<8x128xf32>
    %140 = arith.mulf %138, %139 : vector<8x128xf32>
    %141 = vector.extract_strided_slice %140 {offsets = [0, 0], sizes = [8, 32], strides = [1, 1]} : vector<8x128xf32> to vector<8x32xf32>
    %142 = vector.extract_strided_slice %138 {offsets = [0, 32], sizes = [8, 32], strides = [1, 1]} : vector<8x128xf32> to vector<8x32xf32>
    %143 = vector.extract_strided_slice %138 {offsets = [0, 96], sizes = [8, 32], strides = [1, 1]} : vector<8x128xf32> to vector<8x32xf32>
    %144 = arith.mulf %142, %130 : vector<8x32xf32>
    %145 = arith.addf %144, %141 : vector<8x32xf32>
    %146 = math.tanh %145 : vector<8x32xf32>
    %147 = arith.mulf %143, %146 : vector<8x32xf32>
    %148 = vector.extract_strided_slice %36 {offsets = [56, 0], sizes = [8, 128], strides = [1, 1]} : vector<64x128xf32> to vector<8x128xf32>
    %cst_43 = arith.constant dense<0.000000e+00> : vector<8x128xf32>
    %149 = tpu.matmul %147, %32, %cst_43 {dimension_numbers = #tpu.dot_dimension_numbers<[1], [0], [0], [1], [0, 0, 1, 1], [], []>} : vector<8x32xf32>, vector<32x128xf32>, vector<8x128xf32> -> vector<8x128xf32>
    %150 = arith.addf %148, %149 : vector<8x128xf32>
    %151 = math.tanh %150 : vector<8x128xf32>
    %152 = arith.mulf %38, %151 : vector<8x128xf32>
    %153 = arith.addf %152, %40 : vector<8x128xf32>
    %c64_i32_44 = arith.constant 64 : i32
    %154 = tpu.dynamic_rotate %153 by %c64_i32_44 dim 1 : vector<8x128xf32>, i32 -> vector<8x128xf32>
    %155 = arith.mulf %153, %154 : vector<8x128xf32>
    %156 = vector.extract_strided_slice %155 {offsets = [0, 0], sizes = [8, 32], strides = [1, 1]} : vector<8x128xf32> to vector<8x32xf32>
    %157 = vector.extract_strided_slice %153 {offsets = [0, 32], sizes = [8, 32], strides = [1, 1]} : vector<8x128xf32> to vector<8x32xf32>
    %158 = vector.extract_strided_slice %153 {offsets = [0, 96], sizes = [8, 32], strides = [1, 1]} : vector<8x128xf32> to vector<8x32xf32>
    %159 = arith.mulf %157, %145 : vector<8x32xf32>
    %160 = arith.addf %159, %156 : vector<8x32xf32>
    %161 = math.tanh %160 : vector<8x32xf32>
    %162 = arith.mulf %158, %161 : vector<8x32xf32>
    %c56 = arith.constant 56 : index
    %c0_45 = arith.constant 0 : index
    %163 = vector.load %arg3[%c56, %c0_45] : memref<120x128xf32, #tpu.memory_space<vmem>>, vector<32x32xf32>
    %cst_46 = arith.constant dense<0.000000e+00> : vector<8x32xf32>
    %164 = tpu.matmul %162, %163, %cst_46 {dimension_numbers = #tpu.dot_dimension_numbers<[1], [0], [0], [1], [0, 0, 1, 1], [], []>} : vector<8x32xf32>, vector<32x32xf32>, vector<8x32xf32> -> vector<8x32xf32>
    %165 = vector.broadcast %4 : vector<1x32xf32> to vector<8x32xf32>
    %166 = arith.addf %164, %165 : vector<8x32xf32>
    %cst_47 = arith.constant dense<0.000000e+00> : vector<8x288xf32>
    %167 = tpu.matmul %166, %11, %cst_47 {dimension_numbers = #tpu.dot_dimension_numbers<[1], [0], [0], [1], [0, 0, 1, 1], [], []>} : vector<8x32xf32>, vector<32x288xf32>, vector<8x288xf32> -> vector<8x288xf32>
    %168 = vector.broadcast %5 : vector<1x288xf32> to vector<8x288xf32>
    %169 = arith.addf %167, %168 : vector<8x288xf32>
    %170 = tpu.iota {dimensions = array<i32: 0>} : vector<8x288xi32>
    %171 = tpu.iota {dimensions = array<i32: 1>} : vector<8x288xi32>
    %c1_i32 = arith.constant 1 : i32
    %172 = vector.broadcast %c1_i32 : i32 to vector<8x288xi32>
    %173 = arith.addi %170, %172 : vector<8x288xi32>
    %c32_i32 = arith.constant 32 : i32
    %174 = vector.broadcast %c32_i32 : i32 to vector<8x288xi32>
    %175 = arith.muli %173, %174 : vector<8x288xi32>
    %176 = arith.cmpi sge, %171, %175 : vector<8x288xi32>
    %c2_i32 = arith.constant 2 : i32
    %177 = vector.broadcast %c2_i32 : i32 to vector<8x288xi32>
    %178 = arith.addi %170, %177 : vector<8x288xi32>
    %c32_i32_48 = arith.constant 32 : i32
    %179 = vector.broadcast %c32_i32_48 : i32 to vector<8x288xi32>
    %180 = arith.muli %178, %179 : vector<8x288xi32>
    %181 = arith.cmpi slt, %171, %180 : vector<8x288xi32>
    %182 = arith.andi %176, %181 : vector<8x288xi1>
    %cst_49 = arith.constant 1.000000e+00 : f32
    %cst_50 = arith.constant 0.000000e+00 : f32
    %183 = vector.broadcast %cst_49 : f32 to vector<8x288xf32>
    %184 = vector.broadcast %cst_50 : f32 to vector<8x288xf32>
    %185 = arith.select %182, %183, %184 : vector<8x288xi1>, vector<8x288xf32>
    %cst_51 = arith.constant dense<0.000000e+00> : vector<8x288xf32>
    %186 = tpu.matmul %30, %185, %cst_51 {dimension_numbers = #tpu.dot_dimension_numbers<[1], [0], [0], [1], [0, 0, 1, 1], [], []>} : vector<8x8xf32>, vector<8x288xf32>, vector<8x288xf32> -> vector<8x288xf32>
    %187 = vector.broadcast %10 : vector<1x288xf32> to vector<8x288xf32>
    %188 = arith.addf %186, %187 : vector<8x288xf32>
    %189 = tpu.iota {dimensions = array<i32: 0>} : vector<288x32xi32>
    %190 = tpu.iota {dimensions = array<i32: 1>} : vector<288x32xi32>
    %c32_i32_52 = arith.constant 32 : i32
    %c0_i32 = arith.constant 0 : i32
    %191 = arith.cmpi eq, %c32_i32_52, %c0_i32 : i32
    %c1_i32_53 = arith.constant 1 : i32
    %192 = arith.select %191, %c1_i32_53, %c32_i32_52 : i32
    %193 = vector.broadcast %192 : i32 to vector<288x32xi32>
    %194 = arith.remsi %189, %193 : vector<288x32xi32>
    %c0_i32_54 = arith.constant 0 : i32
    %195 = vector.broadcast %c0_i32_54 : i32 to vector<288x32xi32>
    %196 = arith.cmpi ne, %194, %195 : vector<288x32xi32>
    %c0_i32_55 = arith.constant 0 : i32
    %197 = vector.broadcast %c0_i32_55 : i32 to vector<288x32xi32>
    %198 = arith.cmpi slt, %194, %197 : vector<288x32xi32>
    %c0_i32_56 = arith.constant 0 : i32
    %199 = arith.cmpi slt, %192, %c0_i32_56 : i32
    %200 = vector.broadcast %199 : i1 to vector<288x32xi1>
    %201 = vector.broadcast %200 : vector<288x32xi1> to vector<288x32xi1>
    %202 = arith.xori %198, %201 : vector<288x32xi1>
    %203 = arith.andi %202, %196 : vector<288x32xi1>
    %204 = vector.broadcast %192 : i32 to vector<288x32xi32>
    %205 = arith.addi %194, %204 : vector<288x32xi32>
    %206 = arith.select %203, %205, %194 : vector<288x32xi1>, vector<288x32xi32>
    %207 = arith.cmpi eq, %206, %190 : vector<288x32xi32>
    %cst_57 = arith.constant 1.000000e+00 : f32
    %cst_58 = arith.constant 0.000000e+00 : f32
    %208 = vector.broadcast %cst_57 : f32 to vector<288x32xf32>
    %209 = vector.broadcast %cst_58 : f32 to vector<288x32xf32>
    %210 = arith.select %207, %208, %209 : vector<288x32xi1>, vector<288x32xf32>
    %211 = arith.mulf %188, %169 : vector<8x288xf32>
    %cst_59 = arith.constant dense<0.000000e+00> : vector<8x32xf32>
    %212 = tpu.matmul %211, %210, %cst_59 {dimension_numbers = #tpu.dot_dimension_numbers<[1], [0], [0], [1], [0, 0, 1, 1], [], []>} : vector<8x288xf32>, vector<288x32xf32>, vector<8x32xf32> -> vector<8x32xf32>
    %cst_60 = arith.constant 0.000000e+00 : f32
    %213 = vector.broadcast %cst_60 : f32 to vector<8x32xf32>
    %214 = arith.maximumf %212, %213 : vector<8x32xf32>
    %c56_61 = arith.constant 56 : index
    %c32 = arith.constant 32 : index
    %215 = vector.load %arg3[%c56_61, %c32] : memref<120x128xf32, #tpu.memory_space<vmem>>, vector<32x32xf32>
    %c56_62 = arith.constant 56 : index
    %c64 = arith.constant 64 : index
    %216 = vector.load %arg3[%c56_62, %c64] : memref<120x128xf32, #tpu.memory_space<vmem>>, vector<32x3xf32>
    %cst_63 = arith.constant dense<0.000000e+00> : vector<8x32xf32>
    %217 = tpu.matmul %214, %215, %cst_63 {dimension_numbers = #tpu.dot_dimension_numbers<[1], [0], [0], [1], [0, 0, 1, 1], [], []>} : vector<8x32xf32>, vector<32x32xf32>, vector<8x32xf32> -> vector<8x32xf32>
    %218 = vector.broadcast %6 : vector<1x32xf32> to vector<8x32xf32>
    %219 = arith.addf %217, %218 : vector<8x32xf32>
    %cst_64 = arith.constant 0.000000e+00 : f32
    %220 = vector.broadcast %cst_64 : f32 to vector<8x32xf32>
    %221 = arith.maximumf %219, %220 : vector<8x32xf32>
    %cst_65 = arith.constant dense<0.000000e+00> : vector<8x3xf32>
    %222 = tpu.matmul %221, %216, %cst_65 {dimension_numbers = #tpu.dot_dimension_numbers<[1], [0], [0], [1], [0, 0, 1, 1], [], []>} : vector<8x32xf32>, vector<32x3xf32>, vector<8x3xf32> -> vector<8x3xf32>
    %223 = vector.broadcast %7 : vector<1x3xf32> to vector<8x3xf32>
    %224 = arith.addf %222, %223 : vector<8x3xf32>
    %c0_66 = arith.constant 0 : index
    %c0_67 = arith.constant 0 : index
    %225 = vector.load %arg4[%c0_66, %c0_67] : memref<8x3xf32, #tpu.memory_space<vmem>>, vector<8x3xf32>
    tpu.vector_store %arg4[%c0_66, %c0_67], %224 {strides = array<i32>} : memref<8x3xf32, #tpu.memory_space<vmem>>, vector<8x3xf32>,
    return
  }
}

</mosaic_0001>

<bundles_post_ra>
// kernel: squeeze.1
= control target key start
LH: loop header
LB: loop body
LE: loop exit
PB: predicated region body
PF: predicated region fallthrough
CT: control target
= control target key end

     0   :  { %s6_s6 = smov 3  ;;  %s13_s11 = smov 3  ;;  %vm3_vm0 = vcmask 261120   ;;  %vm10_vm1 = vcmask 1048320   ;;  %vm17_vm2 = vcmask 785920   ;;  %vm24_vm3 = vcmask 523520   ;;  %s90_s0 = inlined_call_operand.vmem [shape: f32[9,1,32], index: 0, kind: input, shape index: {}]   ;;  %s91_s1 = inlined_call_operand.vmem [shape: f32[1,288], index: 1, kind: output, shape index: {}]  }
   0x1   :  { %v2_v0 = vld [vmem:[%s90_s0] ss:$4 sm:$0x7]   ;;  %v48_v1 = vld [vmem:[%s90_s0 + $0x3] ss:$4 sm:%s6_s6]   ;;  %s56_s12 = smov 96  }
   0x2   :  { %8 = vrot.lane.b32.xlu0 %v48_v1, %s56_s12  ;;  %s20_s13 = smov 3  ;;  %4 = vst.msk [vmem:[#allocation0] ss:$8 sm:$0x7] %vm3_vm0, %v2_v0   ;;  %v49_v2 = vld [vmem:[%s90_s0 + $0x2] ss:$4 sm:%s13_s11]  }
   0x3   :  { %v50_v3 = vld [vmem:[%s90_s0 + $0x1] ss:$4 sm:%s20_s13]   ;;  %s57_s0 = smov 32   ;;  %s58_s18 = smov 64  }
   0x4   :  { %22 = vrot.lane.b32.xlu1 %v50_v3, %s57_s0 }
   0x6   :  { %15 = vrot.lane.b32.xlu0 %v49_v2, %s58_s18 }
   0x9   :  { %v41_v4 = vld [vmem:[#allocation0 + $0x10] sm:$0x1] }
   0xa   :  { %52 = vst [vmem:[%s91_s1 + $0x2] sm:$0x1] %v41_v4 }
  0x74   :  { %v9_v5 = vpop.permute.xlu0 %8  }
  0x75   :  { %11 = vst.msk [vmem:[#allocation0] ss:$8 sm:$0x3] %vm10_vm1, %v9_v5  }
  0x76   :  { %v23_v6 = vpop.permute.xlu1 %22  }
  0x78   :  { %v16_v7 = vpop.permute.xlu0 %15  }
  0x79   :  { %18 = vst.msk [vmem:[#allocation0] ss:$8 sm:$0x3] %vm17_vm2, %v16_v7  }
  0x7a   :  { %25 = vst.msk [vmem:[#allocation0] ss:$8 sm:$0x3] %vm24_vm3, %v23_v6  }
  0x81   :  { %v30_v8 = vld [vmem:[#allocation0] sm:$0x1]  ;;  %v35_v9 = vld [vmem:[#allocation0 + $0x8] sm:$0x1] }
  0x82   :  { %33 = vst [vmem:[%s91_s1] sm:$0x1] %v30_v8  ;;  %51 = vst [vmem:[%s91_s1 + $0x1] sm:$0x1] %v35_v9 }

// kernel: tfn_forward.1
= control target key start
LH: loop header
LB: loop body
LE: loop exit
PB: predicated region body
PF: predicated region fallthrough
CT: control target
= control target key end

     0   :  { %v2868_v0 = vmov 0.0   ;;  %vm2869_vm0 = vmmov 0   ;;  %vm47_vm1 = vcmask 130048   ;;  %vm122_vm2 = vcmask 64512   ;;  %s2870_s25 = smov 64   ;;  %s2871_s26 = smov 32   ;;  %s3439_s3 = inlined_call_operand.vmem [shape: f32[120,128], index: 3, kind: input, shape index: {}]   ;;  %s3440_s0 = inlined_call_operand.vmem [shape: f32[8,16], index: 0, kind: input, shape index: {}]   ;;  %s3441_s2 = inlined_call_operand.vmem [shape: f32[48,288], index: 2, kind: input, shape index: {}]   ;;  %s3442_s1 = inlined_call_operand.vmem [shape: f32[64,20], index: 1, kind: input, shape index: {}]   ;;  %s3443_s4 = inlined_call_operand.vmem [shape: f32[8,3], index: 4, kind: output, shape index: {}]  }
   0x1   :  { %2647 = vmatprep.subr.mxu0 %v2868_v0  ;;  %v43_v1 = vld [vmem:[%s3439_s3 + $0x60] sm:$0xff]  ;;  %v42_v2 = vld [vmem:[%s3439_s3 + $0x58] sm:$0xff]  ;;  %2651 = vmatprep.mubr.msk.f32.mxu0 %vm2869_vm0, %v2868_v0  ;;  %v44_v4 = vld [vmem:[%s3439_s3 + $0x68] sm:$0xff]  ;;  %vm311_vm3 = vcmask 1043456   ;;  %vm286_vm4 = vcmask 162816   ;;  %vm420_vm5 = vcmask 261120  }
   0x2   :  { %2648 = vmatpush3.msra.mxu0 %v43_v1  ;;  %v46_v3 = vld [vmem:[%s3440_s0] sm:$0xff]  ;;  %2654 = vmatprep.subr.mxu1 %v2868_v0  ;;  %v273_v10 = vld [vmem:[%s3439_s3 + $0x10] sm:$0xf]  ;;  %v272_v11 = vld [vmem:[%s3439_s3 + $0x8] sm:$0xff]  ;;  %s2873_s20 = smov 96  }
   0x3   :  { %2649 = vmatprep.subr.mxu0 %v2868_v0  ;;  %2656 = vmatprep.mubr.msk.f32.mxu1 %vm2869_vm0, %v2868_v0  ;;  %v17_v5 = vld [vmem:[%s3441_s2] ss:$0 sm:$0xff]  ;;  %v45_v12 = vld [vmem:[%s3439_s3 + $0x70] sm:$0xff]  ;;  %v279_v15 = vld [vmem:[%s3442_s1 + $0x8] sm:$0xff] }
   0x4   :  { %2650 = vmatpush3.msra.mxu0 %v42_v2  ;;  %2655 = vmatpush3.msra.mxu1 %v44_v4  ;;  %v271_v13 = vld [vmem:[%s3439_s3] sm:$0xff]  ;;  %v2949_v16 = vld [vmem:[%s3439_s3 + $0x30] sm:$0xff]  ;;  %v2956_v17 = vld [vmem:[%s3439_s3 + $0x28] sm:$0xff] }
   0x5   :  { %2652 = vmatmul.mubr.msk.f32.vlgmr.msra.gmra.mxu0 %vm47_vm1, %v46_v3  ;;  %2659 = vmatprep.subr.mxu1 %v2868_v0  ;;  %v278_v14 = vld [vmem:[%s3442_s1] sm:$0xff]  ;;  %v2970_v19 = vld [vmem:[%s3439_s3 + $0x18] sm:$0xff]  ;;  %v280_v60 = vld [vmem:[%s3442_s1 + $0x10] sm:$0xff] }
   0x6   :  { %2664 = vmatprep.subr.msk.mxu0 %vm311_vm3, %v273_v10  ;;  %2670 = vmatprep.mubr.msk.f32.mxu0 %vm286_vm4, %v278_v14  ;;  %v2963_v18 = vld [vmem:[%s3439_s3 + $0x20] sm:$0xff]  ;;  %v3011_v34 = vld [vmem:[%s3441_s2 + $0x18] ss:$0 sm:$0xff]  ;;  %v3016_v36 = vld [vmem:[%s3441_s2 + $0x19] ss:$0 sm:$0xff] }
   0x7   :  { %2665 = vmatpush3.msk.msra.mxu0 %vm311_vm3, %v273_v10  ;;  %v18_v20 = vld [vmem:[%s3441_s2 + $0x1] ss:$0 sm:$0xff]  ;;  %v3005_v28 = vld [vmem:[%s3441_s2 + $0x3] ss:$0 sm:$0xff]  ;;  %v281_v61 = vld [vmem:[%s3442_s1 + $0x18] sm:$0xff] }
   0x8   :  { %2666 = vmatprep.subr.mxu0 %v272_v11  ;;  %v282_v62 = vld [vmem:[%s3442_s1 + $0x20] sm:$0xff]  ;;  %v283_v63 = vld [vmem:[%s3442_s1 + $0x28] sm:$0xff]  ;;  %v284_v1 = vld [vmem:[%s3442_s1 + $0x30] sm:$0xff] }
   0x9   :  { %2667 = vmatpush3.msra.mxu0 %v272_v11  ;;  %v285_v2 = vld [vmem:[%s3442_s1 + $0x38] sm:$0xff] }
   0xa   :  { %2668 = vmatprep.subr.mxu0 %v271_v13 }
   0xb   :  { %2669 = vmatpush3.msra.mxu0 %v271_v13 }
   0xc   :  { %2704 = vmatprep.subr.mxu0 %v2868_v0  ;;  %2671 = vmatmul.mubr.msk.f32.vlgmr.msra.gmra.mxu0 %vm286_vm4, %v279_v15 }
   0xd   :  { %2705 = vmatpush3.msra.mxu0 %v2949_v16  ;;  %2673 = vmatprep.mubr.msk.f32.mxu0 %vm286_vm4, %v280_v60 }
   0xe   :  { %2706 = vmatprep.subr.mxu0 %v2868_v0 }
   0xf   :  { %2707 = vmatpush3.msra.mxu0 %v2956_v17 }
  0x10   :  { %2708 = vmatprep.subr.mxu0 %v2868_v0  ;;  %2674 = vmatmul.mubr.msk.f32.gmra.mxu0 %vm286_vm4, %v281_v61 }
  0x11   :  { %2709 = vmatpush3.msra.mxu0 %v2963_v18  ;;  %2676 = vmatprep.mubr.msk.f32.mxu0 %vm286_vm4, %v282_v62 }
  0x12   :  { %2710 = vmatprep.subr.mxu0 %v2868_v0 }
  0x13   :  { %2711 = vmatpush3.msra.mxu0 %v2970_v19 }
  0x14   :  { %2726 = vmatprep.subr.mxu0 %v2868_v0  ;;  %2677 = vmatmul.mubr.msk.f32.gmra.mxu0 %vm286_vm4, %v283_v63 }
  0x15   :  { %2679 = vmatprep.mubr.msk.f32.mxu0 %vm286_vm4, %v284_v1 }
  0x18   :  { %2680 = vmatmul.mubr.msk.f32.gmra.mxu0 %vm286_vm4, %v285_v2 }
  0x19   :  { %2712 = vmatprep.mubr.msk.f32.mxu0 %vm2869_vm0, %v2868_v0 }
  0xc5   :  { %v117_v6 = vpop.f32.mrf.mxu0 }
  0xc6   :  { %v118_v7 = vadd.f32 %v117_v6, %v17_v5 }
  0xc7   :  { %v2653_v8 = vpop.f32.mrf.mxu0 }
  0xc8   :  { %v121_v9 = vmax.f32 %v118_v7, 0.0 }
  0xca   :  { %2657 = vmatmul.mubr.msk.f32.vlgmr.msra.gmra.mxu1 %vm122_vm2, %v121_v9 }
  0xcb   :  { %2661 = vmatprep.mubr.msk.f32.mxu1 %vm2869_vm0, %v2868_v0  ;;  %2660 = vmatpush3.msra.mxu1 %v45_v12 }
  0xcc   :  { %2682 = vmatprep.subr.mxu1 %v2868_v0  ;;  %v2672_v26 = vpop.f32.mrf.mxu0 }
  0xcd   :  { %v387_v48 = vadd.f32 %v2672_v26, %v3005_v28 }
  0xce   :  { %v381_v29 = vpop.f32.mrf.mxu0 }
  0xcf   :  { %v382_v30 = vadd.f32 %v381_v29, %v3005_v28 }
  0xd0   :  { %v2675_v7 = vpop.f32.mrf.mxu0 }
  0xd2   :  { %v391_v8 = vpop.f32.mrf.mxu0 }
  0xd3   :  { %v392_v13 = vadd.f32 %v391_v8, %v3005_v28 }
  0xd4   :  { %v3079_v9 = vpop.f32.mrf.mxu0 }
  0xd6   :  { %v3081_v10 = vpop.f32.mrf.mxu0 }
  0xd8   :  { %v3083_v11 = vpop.f32.mrf.mxu0 }
  0xda   :  { %v3085_v12 = vpop.f32.mrf.mxu0 }
 0x18a   :  { %v192_v21 = vpop.f32.mrf.mxu1 }
 0x18b   :  { %v193_v22 = vadd.f32 %v192_v21, %v18_v20 }
 0x18c   :  { %v2658_v23 = vpop.f32.mrf.mxu1 }
 0x18d   :  { %v196_v24 = vmax.f32 %v193_v22, 0.0 }
 0x18f   :  { %2662 = vmatmul.mubr.msk.f32.vlgmr.msra.gmra.mxu1 %vm122_vm2, %v196_v24 }
 0x190   :  { %2683 = vmatpush3.msra.mxu1 %v2949_v16  ;;  %2690 = vmatprep.mubr.msk.f32.mxu1 %vm2869_vm0, %v2868_v0 }
 0x191   :  { %2684 = vmatprep.subr.mxu1 %v2868_v0 }
 0x192   :  { %2685 = vmatpush3.msra.mxu1 %v2956_v17 }
 0x193   :  { %2686 = vmatprep.subr.mxu1 %v2868_v0 }
 0x194   :  { %2687 = vmatpush3.msra.mxu1 %v2963_v18 }
 0x195   :  { %2688 = vmatprep.subr.mxu1 %v2868_v0 }
 0x196   :  { %2689 = vmatpush3.msra.mxu1 %v2970_v19 }
 0x197   :  { %2691 = vmatmul.mubr.f32.vlgmr.msra.gmra.mxu1 %v2868_v0  ;;  %2693 = vmatprep.subr.mxu1 %v2868_v0 }
 0x198   :  { %2694 = vmatpush3.msra.mxu1 %v2949_v16  ;;  %2701 = vmatprep.mubr.msk.f32.mxu1 %vm2869_vm0, %v2868_v0 }
 0x199   :  { %2695 = vmatprep.subr.mxu1 %v2868_v0 }
 0x19a   :  { %2696 = vmatpush3.msra.mxu1 %v2956_v17 }
 0x19b   :  { %2697 = vmatprep.subr.mxu1 %v2868_v0 }
 0x19c   :  { %2698 = vmatpush3.msra.mxu1 %v2963_v18 }
 0x19d   :  { %2699 = vmatprep.subr.mxu1 %v2868_v0 }
 0x19e   :  { %2700 = vmatpush3.msra.mxu1 %v2970_v19 }
 0x19f   :  { %2715 = vmatprep.subr.mxu1 %v2868_v0 }
 0x24f   :  { %v3000_v25 = vpop.f32.mrf.mxu1 }
 0x251   :  { %v2663_v27 = vpop.f32.mrf.mxu1 }
 0x257   :  { %v490_v31 = vpop.f32.mrf.mxu1 }
 0x258   :  { %v494_v32 = vadd.f32 %v490_v31, %v382_v30 }
 0x259   :  { %v2692_v33 = vpop.f32.mrf.mxu1 }
 0x25a   :  { %2836 = vtanh.f32 %v494_v32 }
 0x267   :  { %v2837_v35 = vpop.eup %2836 }
 0x268   :  { %v496_v37 = vmul.f32 %v2837_v35, %v3011_v34 }
 0x26a   :  { %v497_v38 = vadd.f32 %v496_v37, %v3016_v36  ;;  %v397_v37 = vadd.f32 %v2675_v7, %v3005_v28 }
 0x26c   :  { %498 = vrot.lane.b32.xlu0 %v497_v38, %s2870_s25  ;;  %v501_v41 = vmul.f32 0.0, %v497_v38 }
 0x2de   :  { %v499_v39 = vpop.permute.xlu0 %498 }
 0x2df   :  { %v500_v40 = vmul.f32 %v499_v39, %v497_v38 }
 0x2e1   :  { %503 = vrot.lane.b32.xlu0 %v500_v40, %s2871_s26 }
 0x353   :  { %v504_v42 = vpop.permute.xlu0 %503 }
 0x354   :  { %v506_v43 = vadd.f32 %v504_v42, %v501_v41 }
 0x356   :  { %2838 = vtanh.f32 %v506_v43 }
 0x363   :  { %v2839_v44 = vpop.eup %2838 }
 0x364   :  { %509 = vrot.lane.b32.xlu1 %v2839_v44, %s2870_s25 }
 0x3d6   :  { %v510_v45 = vpop.permute.xlu1 %509 }
 0x3d7   :  { %v512_v46 = vmul.f32 %v510_v45, %v497_v38 }
 0x3d9   :  { %514 = vrot.lane.b32.xlu1 %v512_v46, %s2871_s26 }
 0x44b   :  { %v515_v47 = vpop.permute.xlu1 %514 }
 0x44c   :  { %2702 = vmatmul.mubr.msk.f32.vlgmr.msra.gmra.mxu1 %vm420_vm5, %v515_v47 }
 0x44d   :  { %2716 = vmatpush3.msra.mxu1 %v2949_v16  ;;  %2723 = vmatprep.mubr.msk.f32.mxu1 %vm2869_vm0, %v2868_v0 }
 0x44e   :  { %2717 = vmatprep.subr.mxu1 %v2868_v0 }
 0x44f   :  { %2718 = vmatpush3.msra.mxu1 %v2956_v17 }
 0x450   :  { %2719 = vmatprep.subr.mxu1 %v2868_v0 }
 0x451   :  { %2720 = vmatpush3.msra.mxu1 %v2963_v18 }
 0x452   :  { %2721 = vmatprep.subr.mxu1 %v2868_v0 }
 0x453   :  { %2722 = vmatpush3.msra.mxu1 %v2970_v19 }
 0x454   :  { %2737 = vmatprep.subr.mxu1 %v2868_v0 }
 0x50c   :  { %v584_v49 = vpop.f32.mrf.mxu1 }
 0x50d   :  { %v588_v50 = vadd.f32 %v584_v49, %v387_v48 }
 0x50e   :  { %v2703_v51 = vpop.f32.mrf.mxu1 }
 0x50f   :  { %2840 = vtanh.f32 %v588_v50 }
 0x51c   :  { %v2841_v52 = vpop.eup %2840 }
 0x51d   :  { %v590_v53 = vmul.f32 %v2841_v52, %v3011_v34 }
 0x51f   :  { %v591_v54 = vadd.f32 %v590_v53, %v3016_v36  ;;  %v402_v53 = vadd.f32 %v3081_v10, %v3005_v28 }
 0x521   :  { %592 = vrot.lane.b32.xlu0 %v591_v54, %s2870_s25  ;;  %v595_v57 = vmul.f32 %v591_v54, %v506_v43 }
 0x593   :  { %v593_v55 = vpop.permute.xlu0 %592 }
 0x594   :  { %v594_v56 = vmul.f32 %v593_v55, %v591_v54 }
 0x596   :  { %597 = vrot.lane.b32.xlu1 %v594_v56, %s2871_s26 }
 0x608   :  { %v598_v58 = vpop.permute.xlu1 %597 }
 0x609   :  { %v600_v59 = vadd.f32 %v598_v58, %v595_v57 }
 0x60b   :  { %2842 = vtanh.f32 %v600_v59 }
 0x618   :  { %v2843_v3 = vpop.eup %2842 }
 0x619   :  { %603 = vrot.lane.b32.xlu0 %v2843_v3, %s2870_s25 }
 0x68b   :  { %v604_v4 = vpop.permute.xlu0 %603 }
 0x68c   :  { %v606_v5 = vmul.f32 %v604_v4, %v591_v54 }
 0x68e   :  { %608 = vrot.lane.b32.xlu1 %v606_v5, %s2871_s26 }
 0x700   :  { %v609_v6 = vpop.permute.xlu1 %608 }
 0x701   :  { %2713 = vmatmul.mubr.msk.f32.vlgmr.msra.gmra.mxu0 %vm420_vm5, %v609_v6  ;;  %v407_v6 = vadd.f32 %v3079_v9, %v3005_v28 }
 0x702   :  { %2727 = vmatpush3.msra.mxu0 %v2949_v16  ;;  %2734 = vmatprep.mubr.msk.f32.mxu0 %vm2869_vm0, %v2868_v0 }
 0x703   :  { %2728 = vmatprep.subr.mxu0 %v2868_v0 }
 0x704   :  { %2729 = vmatpush3.msra.mxu0 %v2956_v17 }
 0x705   :  { %2730 = vmatprep.subr.mxu0 %v2868_v0 }
 0x706   :  { %2731 = vmatpush3.msra.mxu0 %v2963_v18 }
 0x707   :  { %2732 = vmatprep.subr.mxu0 %v2868_v0 }
 0x708   :  { %2733 = vmatpush3.msra.mxu0 %v2970_v19 }
 0x709   :  { %2748 = vmatprep.subr.mxu0 %v2868_v0 }
 0x7c1   :  { %v678_v14 = vpop.f32.mrf.mxu0 }
 0x7c2   :  { %v682_v15 = vadd.f32 %v678_v14, %v392_v13 }
 0x7c3   :  { %v2714_v20 = vpop.f32.mrf.mxu0 }
 0x7c4   :  { %2844 = vtanh.f32 %v682_v15 }
 0x7d1   :  { %v2845_v21 = vpop.eup %2844 }
 0x7d2   :  { %v684_v22 = vmul.f32 %v2845_v21, %v3011_v34 }
 0x7d4   :  { %v685_v23 = vadd.f32 %v684_v22, %v3016_v36 }
 0x7d6   :  { %686 = vrot.lane.b32.xlu0 %v685_v23, %s2870_s25  ;;  %v689_v27 = vmul.f32 %v685_v23, %v600_v59 }
 0x848   :  { %v687_v24 = vpop.permute.xlu0 %686 }
 0x849   :  { %v688_v26 = vmul.f32 %v687_v24, %v685_v23  ;;  %v412_v24 = vadd.f32 %v3085_v12, %v3005_v28 }
 0x84b   :  { %691 = vrot.lane.b32.xlu1 %v688_v26, %s2871_s26 }
 0x8bd   :  { %v692_v29 = vpop.permute.xlu1 %691 }
 0x8be   :  { %v694_v30 = vadd.f32 %v692_v29, %v689_v27 }
 0x8c0   :  { %2846 = vtanh.f32 %v694_v30 }
 0x8cd   :  { %v2847_v31 = vpop.eup %2846 }
 0x8ce   :  { %697 = vrot.lane.b32.xlu0 %v2847_v31, %s2870_s25 }
 0x940   :  { %v698_v32 = vpop.permute.xlu0 %697 }
 0x941   :  { %v700_v33 = vmul.f32 %v698_v32, %v685_v23 }
 0x943   :  { %702 = vrot.lane.b32.xlu1 %v700_v33, %s2871_s26 }
 0x9b5   :  { %v703_v35 = vpop.permute.xlu1 %702 }
 0x9b6   :  { %2724 = vmatmul.mubr.msk.f32.vlgmr.msra.gmra.mxu1 %vm420_vm5, %v703_v35 }
 0x9b7   :  { %2738 = vmatpush3.msra.mxu1 %v2949_v16  ;;  %2745 = vmatprep.mubr.msk.f32.mxu1 %vm2869_vm0, %v2868_v0 }
 0x9b8   :  { %2739 = vmatprep.subr.mxu1 %v2868_v0 }
 0x9b9   :  { %2740 = vmatpush3.msra.mxu1 %v2956_v17 }
 0x9ba   :  { %2741 = vmatprep.subr.mxu1 %v2868_v0 }
 0x9bb   :  { %2742 = vmatpush3.msra.mxu1 %v2963_v18 }
 0x9bc   :  { %2743 = vmatprep.subr.mxu1 %v2868_v0 }
 0x9bd   :  { %2744 = vmatpush3.msra.mxu1 %v2970_v19 }
 0x9be   :  { %2759 = vmatprep.subr.mxu1 %v2868_v0 }
 0xa76   :  { %v772_v38 = vpop.f32.mrf.mxu1 }
 0xa77   :  { %v776_v39 = vadd.f32 %v772_v38, %v397_v37 }
 0xa78   :  { %v2725_v40 = vpop.f32.mrf.mxu1 }
 0xa79   :  { %2848 = vtanh.f32 %v776_v39 }
 0xa86   :  { %v2849_v41 = vpop.eup %2848 }
 0xa87   :  { %v778_v42 = vmul.f32 %v2849_v41, %v3011_v34 }
 0xa89   :  { %v779_v43 = vadd.f32 %v778_v42, %v3016_v36 }
 0xa8b   :  { %780 = vrot.lane.b32.xlu0 %v779_v43, %s2870_s25  ;;  %v783_v46 = vmul.f32 %v779_v43, %v694_v30 }
 0xafd   :  { %v781_v44 = vpop.permute.xlu0 %780 }
 0xafe   :  { %v782_v45 = vmul.f32 %v781_v44, %v779_v43 }
 0xb00   :  { %785 = vrot.lane.b32.xlu1 %v782_v45, %s2871_s26 }
 0xb72   :  { %v786_v47 = vpop.permute.xlu1 %785 }
 0xb73   :  { %v788_v48 = vadd.f32 %v786_v47, %v783_v46 }
 0xb75   :  { %2850 = vtanh.f32 %v788_v48 }
 0xb82   :  { %v2851_v49 = vpop.eup %2850 }
 0xb83   :  { %791 = vrot.lane.b32.xlu0 %v2851_v49, %s2870_s25 }
 0xbf5   :  { %v792_v50 = vpop.permute.xlu0 %791 }
 0xbf6   :  { %v794_v51 = vmul.f32 %v792_v50, %v779_v43  ;;  %v417_v43 = vadd.f32 %v3083_v11, %v3005_v28  ;;  %v3171_v28 = vld [vmem:[%s3439_s3 + $0x50] sm:$0xff]  ;;  %v3190_v11 = vld [vmem:[%s3439_s3 + $0x38] sm:$0xff] }
 0xbf8   :  { %796 = vrot.lane.b32.xlu1 %v794_v51, %s2871_s26 }
 0xc6a   :  { %v797_v52 = vpop.permute.xlu1 %796 }
 0xc6b   :  { %2735 = vmatmul.mubr.msk.f32.vlgmr.msra.gmra.mxu0 %vm420_vm5, %v797_v52 }
 0xc6c   :  { %2749 = vmatpush3.msra.mxu0 %v2949_v16  ;;  %2756 = vmatprep.mubr.msk.f32.mxu0 %vm2869_vm0, %v2868_v0 }
 0xc6d   :  { %2750 = vmatprep.subr.mxu0 %v2868_v0 }
 0xc6e   :  { %2751 = vmatpush3.msra.mxu0 %v2956_v17 }
 0xc6f   :  { %2752 = vmatprep.subr.mxu0 %v2868_v0 }
 0xc70   :  { %2753 = vmatpush3.msra.mxu0 %v2963_v18 }
 0xc71   :  { %2754 = vmatprep.subr.mxu0 %v2868_v0 }
 0xc72   :  { %2755 = vmatpush3.msra.mxu0 %v2970_v19 }
 0xc73   :  { %2770 = vmatprep.subr.mxu0 %v2868_v0 }
 0xd2b   :  { %v866_v54 = vpop.f32.mrf.mxu0 }
 0xd2c   :  { %v870_v55 = vadd.f32 %v866_v54, %v402_v53 }
 0xd2d   :  { %v2736_v56 = vpop.f32.mrf.mxu0 }
 0xd2e   :  { %2852 = vtanh.f32 %v870_v55  ;;  %v40_v56 = vld [vmem:[%s3441_s2 + $0x80] sm:$0xff] }
 0xd3b   :  { %v2853_v57 = vpop.eup %2852 }
 0xd3c   :  { %v872_v58 = vmul.f32 %v2853_v57, %v3011_v34  ;;  %v39_v57 = vld [vmem:[%s3441_s2 + $0x78] sm:$0xff] }
 0xd3e   :  { %v873_v59 = vadd.f32 %v872_v58, %v3016_v36  ;;  %v37_v58 = vld [vmem:[%s3441_s2 + $0x68] sm:$0xff] }
 0xd40   :  { %874 = vrot.lane.b32.xlu0 %v873_v59, %s2870_s25  ;;  %v877_v62 = vmul.f32 %v873_v59, %v788_v48 }
 0xdb2   :  { %v875_v60 = vpop.permute.xlu0 %874 }
 0xdb3   :  { %v876_v61 = vmul.f32 %v875_v60, %v873_v59  ;;  %v34_v60 = vld [vmem:[%s3441_s2 + $0x50] sm:$0xff] }
 0xdb5   :  { %879 = vrot.lane.b32.xlu1 %v876_v61, %s2871_s26  ;;  %v33_v61 = vld [vmem:[%s3441_s2 + $0x48] sm:$0xff] }
 0xe27   :  { %v880_v63 = vpop.permute.xlu1 %879 }
 0xe28   :  { %v882_v1 = vadd.f32 %v880_v63, %v877_v62 }
 0xe2a   :  { %2854 = vtanh.f32 %v882_v1 }
 0xe37   :  { %v2855_v2 = vpop.eup %2854 }
 0xe38   :  { %885 = vrot.lane.b32.xlu0 %v2855_v2, %s2870_s25 }
 0xeaa   :  { %v886_v3 = vpop.permute.xlu0 %885 }
 0xeab   :  { %v888_v4 = vmul.f32 %v886_v3, %v873_v59  ;;  %v36_v59 = vld [vmem:[%s3441_s2 + $0x60] sm:$0xff]  ;;  %v38_v3 = vld [vmem:[%s3441_s2 + $0x70] sm:$0xff] }
 0xead   :  { %890 = vrot.lane.b32.xlu1 %v888_v4, %s2871_s26  ;;  %v1251_v4 = vlaneseq }
 0xf1f   :  { %v891_v5 = vpop.permute.xlu1 %890 }
 0xf20   :  { %2746 = vmatmul.mubr.msk.f32.vlgmr.msra.gmra.mxu1 %vm420_vm5, %v891_v5  ;;  %v3227_v5 = vshrl.u32 %v1251_v4, 7 }
 0xf21   :  { %2760 = vmatpush3.msra.mxu1 %v2949_v16  ;;  %2767 = vmatprep.mubr.msk.f32.mxu1 %vm2869_vm0, %v2868_v0 }
 0xf22   :  { %2761 = vmatprep.subr.mxu1 %v2868_v0 }
 0xf23   :  { %2762 = vmatpush3.msra.mxu1 %v2956_v17 }
 0xf24   :  { %2763 = vmatprep.subr.mxu1 %v2868_v0 }
 0xf25   :  { %2764 = vmatpush3.msra.mxu1 %v2963_v18 }
 0xf26   :  { %2765 = vmatprep.subr.mxu1 %v2868_v0 }
 0xf27   :  { %2766 = vmatpush3.msra.mxu1 %v2970_v19 }
 0xf28   :  { %1293 = vmatprep.subr.mxu1 %v40_v56  ;;  %v1615_v56 = vadd.s32 192, %v3227_v5 }
 0xfe0   :  { %v960_v7 = vpop.f32.mrf.mxu1 }
 0xfe1   :  { %v964_v16 = vadd.f32 %v960_v7, %v407_v6  ;;  %v35_v6 = vld [vmem:[%s3441_s2 + $0x58] sm:$0xff]  ;;  %v3232_v7 = vand.u32 127, %v1251_v4 }
 0xfe2   :  { %v2747_v8 = vpop.f32.mrf.mxu1 }
 0xfe3   :  { %2856 = vtanh.f32 %v964_v16  ;;  %v1416_v16 = vadd.s32 1, %v3227_v5  ;;  %v1421_v8 = vadd.s32 2, %v3227_v5 }
 0xff0   :  { %v2857_v10 = vpop.eup %2856 }
 0xff1   :  { %v966_v13 = vmul.f32 %v2857_v10, %v3011_v34  ;;  %v31_v10 = vld [vmem:[%s3441_s2 + $0x38] sm:$0xff] }
 0xff3   :  { %v967_v17 = vadd.f32 %v966_v13, %v3016_v36  ;;  %v30_v13 = vld [vmem:[%s3441_s2 + $0x30] sm:$0xff] }
 0xff5   :  { %968 = vrot.lane.b32.xlu0 %v967_v17, %s2870_s25  ;;  %v971_v15 = vmul.f32 %v967_v17, %v882_v1  ;;  %v41_v1 = vld [vmem:[%s3441_s2 + $0x88] sm:$0xff] }
0x1067   :  { %v969_v14 = vpop.permute.xlu0 %968 }
0x1068   :  { %v970_v18 = vmul.f32 %v969_v14, %v967_v17  ;;  %v1414_v14 = vadd.s32 128, %v3232_v7 }
0x106a   :  { %973 = vrot.lane.b32.xlu1 %v970_v18, %s2871_s26  ;;  %v1417_v18 = vmul.u32 32, %v1416_v16 }
0x106c   :  { %vm1419_vm6 = vcmp.ge.s32.totalorder %v1414_v14, %v1417_v18  ;;  %vm1418_vm8 = vcmp.ge.s32.totalorder %v3232_v7, %v1417_v18 }
0x10dc   :  { %v974_v19 = vpop.permute.xlu1 %973 }
0x10dd   :  { %v976_v20 = vadd.f32 %v974_v19, %v971_v15  ;;  %v1422_v15 = vmul.u32 32, %v1421_v8  ;;  %v1415_v19 = vadd.s32 256, %v3232_v7 }
0x10df   :  { %2858 = vtanh.f32 %v976_v20  ;;  %vm1424_vm7 = vcmp.lt.s32.totalorder %v1414_v14, %v1422_v15  ;;  %vm1423_vm9 = vcmp.lt.s32.totalorder %v3232_v7, %v1422_v15  ;;  %vm1420_vm11 = vcmp.ge.s32.totalorder %v1415_v19, %v1417_v18 }
0x10e0   :  { %vm1427_vm10 = vmand %vm1419_vm6, %vm1424_vm7  ;;  %vm1425_vm12 = vcmp.lt.s32.totalorder %v1415_v19, %v1422_v15  ;;  %v1611_v14 = vadd.s32 160, %v3227_v5  ;;  %v1626_v18 = vadd.s32 280, %v3227_v5  ;;  %v1595_v19 = vadd.s32 32, %v3227_v5 }
0x10e1   :  { %vm3252_vm13 = vmand %vm1418_vm8, %vm1423_vm9 }
0x10e2   :  { %vm3256_vm14 = vmand %vm1420_vm11, %vm1425_vm12 }
0x10ec   :  { %v2859_v9 = vpop.eup %2858 }
0x10ed   :  { %979 = vrot.lane.b32.xlu0 %v2859_v9, %s2870_s25  ;;  %v1771_v9 = vand.u32 31, %v1611_v14 }
0x115f   :  { %v980_v21 = vpop.permute.xlu0 %979 }
0x1160   :  { %v982_v22 = vmul.f32 %v980_v21, %v967_v17  ;;  %v32_v17 = vld [vmem:[%s3441_s2 + $0x40] sm:$0xff]  ;;  %v1876_v21 = vand.u32 31, %v1626_v18 }
0x1162   :  { %984 = vrot.lane.b32.xlu1 %v982_v22, %s2871_s26  ;;  %v1622_v22 = vadd.s32 248, %v3227_v5 }
0x11d4   :  { %v985_v23 = vpop.permute.xlu1 %984 }
0x11d5   :  { %2757 = vmatmul.mubr.msk.f32.vlgmr.msra.gmra.mxu0 %vm420_vm5, %v985_v23  ;;  %v1606_v23 = vadd.s32 120, %v3227_v5 }
0x11d6   :  { %2778 = vmatprep.mubr.msk.f32.mxu0 %vm2869_vm0, %v2868_v0  ;;  %2771 = vmatpush3.msra.mxu0 %v3171_v28 }
0x11d7   :  { %2772 = vmatprep.subr.mxu0 %v2868_v0 }
0x1295   :  { %v1054_v26 = vpop.f32.mrf.mxu0 }
0x1296   :  { %v1058_v27 = vadd.f32 %v1054_v26, %v412_v24  ;;  %v19_v24 = vld [vmem:[%s3441_s2 + $0x2] ss:$0 sm:$0xff]  ;;  %v21_v26 = vld [vmem:[%s3441_s2 + $0x4] ss:$0 sm:$0xff] }
0x1297   :  { %v2758_v29 = vpop.f32.mrf.mxu0 }
0x1298   :  { %2860 = vtanh.f32 %v1058_v27  ;;  %v1621_v27 = vadd.s32 240, %v3227_v5  ;;  %v1848_v29 = vand.u32 31, %v1622_v22  ;;  %v1659_v22 = vand.u32 31, %v1595_v19 }
0x129a   :  { %vm2090_vm15 = vcmp.eq.s32.totalorder %v1848_v29, %v3232_v7  ;;  %v1609_v29 = vadd.s32 144, %v3227_v5 }
0x12a5   :  { %v2861_v30 = vpop.eup %2860 }
0x12a6   :  { %v1060_v31 = vmul.f32 %v2861_v30, %v3011_v34  ;;  %v1605_v30 = vadd.s32 112, %v3227_v5 }
0x12a8   :  { %v1061_v32 = vadd.f32 %v1060_v31, %v3016_v36 }
0x12aa   :  { %1062 = vrot.lane.b32.xlu0 %v1061_v32, %s2870_s25  ;;  %v1065_v37 = vmul.f32 %v1061_v32, %v976_v20  ;;  %v2872_v20 = vmov 1.0  }
0x131c   :  { %v1063_v33 = vpop.permute.xlu0 %1062 }
0x131d   :  { %v1064_v35 = vmul.f32 %v1063_v33, %v1061_v32  ;;  %v267_v33 = vadd.f32 %v3000_v25, %v19_v24  ;;  %v1625_v24 = vadd.s32 272, %v3227_v5 }
0x131f   :  { %1067 = vrot.lane.b32.xlu1 %v1064_v35, %s2871_s26 }
0x1391   :  { %v1068_v38 = vpop.permute.xlu1 %1067 }
0x1392   :  { %v1070_v39 = vadd.f32 %v1068_v38, %v1065_v37  ;;  %v1736_v37 = vand.u32 31, %v1606_v23  ;;  %v1604_v38 = vadd.s32 104, %v3227_v5  ;;  %v1610_v23 = vadd.s32 152, %v3227_v5 }
0x1394   :  { %2862 = vtanh.f32 %v1070_v39  ;;  %vm2074_vm1 = vcmp.eq.s32.totalorder %v1736_v37, %v3232_v7  ;;  %v1608_v37 = vadd.s32 136, %v3227_v5 }
0x13a1   :  { %v2863_v12 = vpop.eup %2862 }
0x13a2   :  { %1073 = vrot.lane.b32.xlu0 %v2863_v12, %s2870_s25  ;;  %v1841_v12 = vand.u32 31, %v1621_v27  ;;  %v1764_v27 = vand.u32 31, %v1610_v23 }
0x13a4   :  { %vm2089_vm3 = vcmp.eq.s32.totalorder %v1841_v12, %v3232_v7  ;;  %v1623_v12 = vadd.s32 256, %v3227_v5 }
0x1414   :  { %v1074_v40 = vpop.permute.xlu0 %1073 }
0x1415   :  { %v1076_v41 = vmul.f32 %v1074_v40, %v1061_v32  ;;  %v1620_v32 = vadd.s32 232, %v3227_v5  ;;  %v1619_v40 = vadd.s32 224, %v3227_v5 }
0x1417   :  { %1078 = vrot.lane.b32.xlu1 %v1076_v41, %s2871_s26  ;;  %v1729_v41 = vand.u32 31, %v1605_v30  ;;  %v1834_v25 = vand.u32 31, %v1620_v32  ;;  %v1869_v30 = vand.u32 31, %v1625_v24  ;;  %v1757_v32 = vand.u32 31, %v1609_v29  ;;  %v24_v24 = vld [vmem:[%s3441_s2 + $0x6] ss:$0 sm:$0xff] }
0x1419   :  { %vm2073_vm4 = vcmp.eq.s32.totalorder %v1729_v41, %v3232_v7  ;;  %vm2088_vm6 = vcmp.eq.s32.totalorder %v1834_v25, %v3232_v7  ;;  %v1592_v41 = vadd.s32 8, %v3227_v5  ;;  %v1855_v25 = vand.u32 31, %v1623_v12 }
0x1489   :  { %v1079_v42 = vpop.permute.xlu1 %1078 }
0x148a   :  { %2768 = vmatmul.mubr.msk.f32.vlgmr.msra.gmra.mxu1 %vm420_vm5, %v1079_v42  ;;  %v1603_v42 = vadd.s32 96, %v3227_v5 }
0x148b   :  { %1333 = vmatprep.mubr.f32.mxu1 %v2868_v0  ;;  %1294 = vmatpush1.msra.mxu1 %v39_v57 }
0x148c   :  { %1295 = vmatprep.subr.mxu1 %v37_v58  ;;  %v1599_v58 = vadd.s32 64, %v3227_v5 }
0x148d   :  { %1296 = vmatpush1.msra.mxu1 %v36_v59 }
0x148e   :  { %1297 = vmatprep.subr.mxu1 %v34_v60  ;;  %v1614_v60 = vadd.s32 184, %v3227_v5 }
0x148f   :  { %1298 = vmatpush1.msra.mxu1 %v33_v61 }
0x1490   :  { %1299 = vmatprep.subr.mxu1 %v31_v10  ;;  %v1792_v4 = vand.u32 31, %v1614_v60  ;;  %v1612_v10 = vadd.s32 168, %v3227_v5 }
0x1491   :  { %1300 = vmatpush1.msra.mxu1 %v30_v13  ;;  %v1596_v13 = vadd.s32 40, %v3227_v5 }
0x1492   :  { %2483 = vmatprep.subr.msk.mxu1 %vm1427_vm10, %v2872_v20 }
0x1493   :  { %v1666_v15 = vand.u32 31, %v1596_v13 }
0x154a   :  { %v1148_v44 = vpop.f32.mrf.mxu1 }
0x154b   :  { %v1152_v45 = vadd.f32 %v1148_v44, %v417_v43  ;;  %v1618_v43 = vadd.s32 216, %v3227_v5  ;;  %v270_v44 = vmax.f32 %v267_v33, 0.0  ;;  %v1624_v33 = vadd.s32 264, %v3227_v5 }
0x154c   :  { %v2769_v46 = vpop.f32.mrf.mxu1 }
0x154d   :  { %2864 = vtanh.f32 %v1152_v45  ;;  %v1722_v45 = vand.u32 31, %v1604_v38  ;;  %v1602_v46 = vadd.s32 88, %v3227_v5  ;;  %v1862_v38 = vand.u32 31, %v1624_v33 }
0x154f   :  { %vm2072_vm7 = vcmp.eq.s32.totalorder %v1722_v45, %v3232_v7 }
0x155a   :  { %v2865_v47 = vpop.eup %2864 }
0x155b   :  { %v1154_v48 = vmul.f32 %v2865_v47, %v3011_v34  ;;  %v3176_v34 = vld [vmem:[%s3439_s3 + $0x48] sm:$0xff]  ;;  %v1827_v47 = vand.u32 31, %v1619_v40  ;;  %v1750_v40 = vand.u32 31, %v1608_v37 }
0x155c   :  { %2773 = vmatpush3.msra.mxu0 %v3176_v34 }
0x155d   :  { %v1155_v49 = vadd.f32 %v1154_v48, %v3016_v36  ;;  %v3183_v36 = vld [vmem:[%s3439_s3 + $0x40] sm:$0xff]  ;;  %2774 = vmatprep.subr.mxu0 %v2868_v0  ;;  %v1617_v48 = vadd.s32 208, %v3227_v5 }
0x155e   :  { %2775 = vmatpush3.msra.mxu0 %v3183_v36 }
0x155f   :  { %1156 = vrot.lane.b32.xlu0 %v1155_v49, %s2870_s25  ;;  %v1159_v52 = vmul.f32 %v1155_v49, %v1070_v39  ;;  %2776 = vmatprep.subr.mxu0 %v2868_v0 }
0x1560   :  { %2777 = vmatpush3.msra.mxu0 %v3190_v11 }
0x1561   :  { %2781 = vmatprep.subr.mxu0 %v2868_v0 }
0x15d1   :  { %v1157_v50 = vpop.permute.xlu0 %1156 }
0x15d2   :  { %v1158_v51 = vmul.f32 %v1157_v50, %v1155_v49  ;;  %v1601_v50 = vadd.s32 80, %v3227_v5 }
0x15d4   :  { %1161 = vrot.lane.b32.xlu1 %v1158_v51, %s2871_s26  ;;  %v1820_v51 = vand.u32 31, %v1618_v43  ;;  %v1701_v57 = vand.u32 31, %v1601_v50  ;;  %v1631_v43 = vand.u32 31, %v3227_v5 }
0x15d6   :  { %vm2086_vm9 = vcmp.eq.s32.totalorder %v1820_v51, %v3232_v7  ;;  %vm2069_vm12 = vcmp.eq.s32.totalorder %v1701_v57, %v3232_v7 }
0x1646   :  { %v1162_v53 = vpop.permute.xlu1 %1161 }
0x1647   :  { %v1164_v54 = vadd.f32 %v1162_v53, %v1159_v52  ;;  %v1616_v52 = vadd.s32 200, %v3227_v5  ;;  %v1708_v53 = vand.u32 31, %v1602_v46  ;;  %v2460_v46 = vld [vmem:[%s3441_s2 + $0x1a] ss:$8 sm:$0x7] }
0x1649   :  { %2866 = vtanh.f32 %v1164_v54  ;;  %v1600_v54 = vadd.s32 72, %v3227_v5  ;;  %v1806_v59 = vand.u32 31, %v1616_v52  ;;  %vm2070_vm10 = vcmp.eq.s32.totalorder %v1708_v53, %v3232_v7 }
0x164b   :  { %v1694_v61 = vand.u32 31, %v1600_v54 }
0x1656   :  { %v2867_v55 = vpop.eup %2866 }
0x1657   :  { %1167 = vrot.lane.b32.xlu0 %v2867_v55, %s2870_s25  ;;  %v1813_v55 = vand.u32 31, %v1617_v48 }
0x1659   :  { %vm2085_vm11 = vcmp.eq.s32.totalorder %v1813_v55, %v3232_v7 }
0x165b   :  { %2288 = vrot.lane.b32.xlu0 %v3171_v28, %s2873_s20 }
0x165f   :  { %2284 = vrot.lane.b32.xlu0 %v3183_v36, %s2873_s20 }
0x1663   :  { %2374 = vrot.lane.b32.xlu0 %v3171_v28, %s2870_s25  ;;  %v1257_v28 = vsub.s32 1, %v3227_v5 }
0x1665   :  { %v1440_v53 = vrot.slane %v2460_v46, %v1257_v28 }
0x1667   :  { %2370 = vrot.lane.b32.xlu0 %v3183_v36, %s2870_s25 }
0x16c9   :  { %v1168_v62 = vpop.permute.xlu0 %1167 }
0x16ca   :  { %v1170_v63 = vmul.f32 %v1168_v62, %v1155_v49  ;;  %v1715_v49 = vand.u32 31, %v1603_v42  ;;  %v1598_v62 = vadd.s32 56, %v3227_v5  ;;  %v1607_v42 = vadd.s32 128, %v3227_v5 }
0x16cc   :  { %1176 = vrot.lane.b32.xlu1 %v1170_v63, %s2871_s26  ;;  %vm2071_vm8 = vcmp.eq.s32.totalorder %v1715_v49, %v3232_v7  ;;  %v1799_v63 = vand.u32 31, %v1615_v56  ;;  %v1743_v45 = vand.u32 31, %v1607_v42 }
0x16d0   :  { %2286 = vrot.lane.b32.xlu1 %v3176_v34, %s2873_s20 }
0x16d4   :  { %2282 = vrot.lane.b32.xlu1 %v3190_v11, %s2873_s20 }
0x16d8   :  { %2372 = vrot.lane.b32.xlu1 %v3176_v34, %s2870_s25  ;;  %v1253_v34 = vsub.s32 0, %v3227_v5 }
0x16da   :  { %v1436_v51 = vrot.slane %v2460_v46, %v1253_v34 }
0x16dc   :  { %2368 = vrot.lane.b32.xlu1 %v3190_v11, %s2870_s25 }
0x173e   :  { %v1177_v2 = vpop.permute.xlu1 %1176 }
0x173f   :  { %2779 = vmatmul.mubr.msk.f32.vlgmr.msra.gmra.mxu0 %vm420_vm5, %v1177_v2  ;;  %v1687_v2 = vand.u32 31, %v1599_v58 }
0x1740   :  { %2782 = vmatpush3.msra.mxu0 %v41_v1  ;;  %2789 = vmatprep.mubr.msk.f32.mxu0 %vm2869_vm0, %v2868_v0  ;;  %v1613_v1 = vadd.s32 176, %v3227_v5 }
0x1741   :  { %2783 = vmatprep.subr.mxu0 %v2868_v0 }
0x1742   :  { %2784 = vmatpush3.msra.mxu0 %v38_v3  ;;  %v1597_v3 = vadd.s32 48, %v3227_v5  ;;  %v1785_v16 = vand.u32 31, %v1613_v1 }
0x1743   :  { %2785 = vmatprep.subr.mxu0 %v2868_v0 }
0x1744   :  { %2786 = vmatpush3.msra.mxu0 %v35_v6  ;;  %v1680_v6 = vand.u32 31, %v1598_v62  ;;  %v1673_v8 = vand.u32 31, %v1597_v3 }
0x1745   :  { %2787 = vmatprep.subr.mxu0 %v2868_v0 }
0x1746   :  { %2788 = vmatpush3.msra.mxu0 %v32_v17  ;;  %v1778_v17 = vand.u32 31, %v1612_v10 }
0x1747   :  { %2792 = vmatprep.subr.mxu0 %v2868_v0 }
0x17ff   :  { %v1246_v31 = vpop.f32.mrf.mxu0 }
0x1800   :  { %v1247_v35 = vadd.f32 %v1246_v31, %v21_v26  ;;  %v1594_v26 = vadd.s32 24, %v3227_v5 }
0x1801   :  { %v2780_v39 = vpop.f32.mrf.mxu0 }
0x1802   :  { %2481 = vmatmul.mubr.msk.f32.vlgmr.msra.gmra.mxu1 %vm420_vm5, %v1247_v35  ;;  %2790 = vmatmul.mubr.msk.f32.vlgmr.msra.gmra.mxu0 %vm420_vm5, %v1247_v35  ;;  %v1652_v31 = vand.u32 31, %v1594_v26  ;;  %v1593_v35 = vadd.s32 16, %v3227_v5 }
0x1803   :  { %2484 = vmatpush1.msk.msra.mxu1 %vm3252_vm13, %v2872_v20  ;;  %1515 = vmatprep.mubr.f32.mxu1 %v2868_v0  ;;  %vm2084_vm13 = vcmp.eq.s32.totalorder %v1806_v59, %v3232_v7 }
0x1804   :  { %2793 = vmatpush3.msk.msra.mxu0 %vm3256_vm14, %v2872_v20  ;;  %2794 = vmatprep.mubr.msk.f32.mxu0 %vm2869_vm0, %v2868_v0  ;;  %vm2068_vm14 = vcmp.eq.s32.totalorder %v1694_v61, %v3232_v7  ;;  %v1645_v39 = vand.u32 31, %v1593_v35 }
0x1805   :  { %2597 = vmatprep.subr.msk.mxu1 %vm2090_vm15, %v2872_v20  ;;  %2797 = vmatprep.subr.mxu0 %v2868_v0  ;;  %vm2083_vm15 = vcmp.eq.s32.totalorder %v1799_v63, %v3232_v7 }
0x1806   :  { %2485 = vmatmul.mubr.msk.f32.vlgmr.msra.gmra.mxu1 %vm122_vm2, %v270_v44  ;;  %2795 = vmatmul.mubr.msk.f32.vlgmr.msra.gmra.mxu0 %vm122_vm2, %v270_v44  ;;  %vm2087_vm2 = vcmp.eq.s32.totalorder %v1827_v47, %v3232_v7  ;;  %v1638_v44 = vand.u32 31, %v1592_v41 }
0x1807   :  { %2598 = vmatpush3.msk.msra.mxu1 %vm2074_vm1, %v2872_v20  ;;  %2805 = vmatprep.mubr.msk.f32.mxu0 %vm2869_vm0, %v2868_v0  ;;  %vm2067_vm1 = vcmp.eq.s32.totalorder %v1687_v2, %v3232_v7 }
0x1808   :  { %2599 = vmatprep.subr.msk.mxu1 %vm2089_vm3, %v2872_v20  ;;  %vm2082_vm3 = vcmp.eq.s32.totalorder %v1792_v4, %v3232_v7  ;;  %v2289_v4 = vpop.permute.xlu0 %2288 }
0x1809   :  { %2600 = vmatpush3.msk.msra.mxu1 %vm2073_vm4, %v2872_v20  ;;  %vm2066_vm4 = vcmp.eq.s32.totalorder %v1680_v6, %v3232_v7  ;;  %v2287_v6 = vpop.permute.xlu1 %2286 }
0x180a   :  { %2601 = vmatprep.subr.msk.mxu1 %vm2088_vm6, %v2872_v20  ;;  %vm2081_vm6 = vcmp.eq.s32.totalorder %v1785_v16, %v3232_v7 }
0x180b   :  { %2602 = vmatpush3.msk.msra.mxu1 %vm2072_vm7, %v2872_v20  ;;  %vm2065_vm7 = vcmp.eq.s32.totalorder %v1673_v8, %v3232_v7 }
0x180c   :  { %2603 = vmatprep.subr.msk.mxu1 %vm2087_vm2, %v2872_v20  ;;  %vm2080_vm2 = vcmp.eq.s32.totalorder %v1778_v17, %v3232_v7  ;;  %v2285_v16 = vpop.permute.xlu0 %2284 }
0x180d   :  { %2604 = vmatpush3.msk.msra.mxu1 %vm2071_vm8, %v2872_v20  ;;  %vm2064_vm8 = vcmp.eq.s32.totalorder %v1666_v15, %v3232_v7  ;;  %v2283_v8 = vpop.permute.xlu1 %2282 }
0x180e   :  { %2605 = vmatprep.subr.msk.mxu1 %vm2086_vm9, %v2872_v20  ;;  %vm2079_vm9 = vcmp.eq.s32.totalorder %v1771_v9, %v3232_v7 }
0x180f   :  { %2606 = vmatpush3.msk.msra.mxu1 %vm2070_vm10, %v2872_v20  ;;  %vm2094_vm10 = vcmp.eq.s32.totalorder %v1876_v21, %v3232_v7 }
0x1810   :  { %2607 = vmatprep.subr.msk.mxu1 %vm2085_vm11, %v2872_v20  ;;  %vm2063_vm11 = vcmp.eq.s32.totalorder %v1659_v22, %v3232_v7  ;;  %2798 = vmatpush3.msk.msra.mxu0 %vm2094_vm10, %v2872_v20  ;;  %v2375_v9 = vpop.permute.xlu0 %2374 }
0x1811   :  { %2608 = vmatpush3.msk.msra.mxu1 %vm2069_vm12, %v2872_v20  ;;  %2799 = vmatprep.subr.mxu0 %v2868_v0  ;;  %vm2078_vm12 = vcmp.eq.s32.totalorder %v1764_v27, %v3232_v7  ;;  %v2373_v21 = vpop.permute.xlu1 %2372 }
0x1812   :  { %2609 = vmatprep.subr.msk.mxu1 %vm2084_vm13, %v2872_v20  ;;  %vm2093_vm13 = vcmp.eq.s32.totalorder %v1869_v30, %v3232_v7 }
0x1813   :  { %2610 = vmatpush3.msk.msra.mxu1 %vm2068_vm14, %v2872_v20  ;;  %vm2062_vm14 = vcmp.eq.s32.totalorder %v1652_v31, %v3232_v7  ;;  %2800 = vmatpush3.msk.msra.mxu0 %vm2093_vm13, %v2872_v20  ;;  %v25_v31 = vld [vmem:[%s3441_s2 + $0x7] ss:$0 sm:$0xff] }
0x1814   :  { %2611 = vmatprep.subr.msk.mxu1 %vm2083_vm15, %v2872_v20  ;;  %vm2077_vm15 = vcmp.eq.s32.totalorder %v1757_v32, %v3232_v7  ;;  %2801 = vmatprep.subr.mxu0 %v2868_v0  ;;  %v2371_v22 = vpop.permute.xlu0 %2370 }
0x1815   :  { %2612 = vmatpush3.msk.msra.mxu1 %vm2067_vm1, %v2872_v20  ;;  %vm2092_vm1 = vcmp.eq.s32.totalorder %v1862_v38, %v3232_v7  ;;  %v2369_v23 = vpop.permute.xlu1 %2368 }
0x1816   :  { %2613 = vmatprep.subr.msk.mxu1 %vm2082_vm3, %v2872_v20  ;;  %vm2061_vm3 = vcmp.eq.s32.totalorder %v1645_v39, %v3232_v7  ;;  %2802 = vmatpush3.msk.msra.mxu0 %vm2092_vm1, %v2872_v20 }
0x1817   :  { %2614 = vmatpush3.msk.msra.mxu1 %vm2066_vm4, %v2872_v20  ;;  %vm2076_vm4 = vcmp.eq.s32.totalorder %v1750_v40, %v3232_v7  ;;  %2803 = vmatprep.subr.mxu0 %v2868_v0 }
0x1818   :  { %2615 = vmatprep.subr.msk.mxu1 %vm2081_vm6, %v2872_v20  ;;  %vm2091_vm6 = vcmp.eq.s32.totalorder %v1855_v25, %v3232_v7 }
0x1819   :  { %2616 = vmatpush3.msk.msra.mxu1 %vm2065_vm7, %v2872_v20  ;;  %2804 = vmatpush3.msk.msra.mxu0 %vm2091_vm6, %v2872_v20  ;;  %vm2060_vm7 = vcmp.eq.s32.totalorder %v1638_v44, %v3232_v7 }
0x181a   :  { %2617 = vmatprep.subr.msk.mxu1 %vm2080_vm2, %v2872_v20  ;;  %vm2075_vm2 = vcmp.eq.s32.totalorder %v1743_v45, %v3232_v7  ;;  %2808 = vmatprep.subr.mxu0 %v2868_v0 }
0x181b   :  { %2618 = vmatpush3.msk.msra.mxu1 %vm2064_vm8, %v2872_v20  ;;  %vm2059_vm8 = vcmp.eq.s32.totalorder %v1631_v43, %v3232_v7  ;;  %v1261_v7 = vsub.s32 2, %v3227_v5 }
0x181c   :  { %2619 = vmatprep.subr.msk.mxu1 %vm2079_vm9, %v2872_v20 }
0x181d   :  { %2620 = vmatpush3.msk.msra.mxu1 %vm2063_vm11, %v2872_v20  ;;  %v1444_v49 = vrot.slane %v2460_v46, %v1261_v7 }
0x181e   :  { %2621 = vmatprep.subr.msk.mxu1 %vm2078_vm12, %v2872_v20 }
0x181f   :  { %2622 = vmatpush3.msk.msra.mxu1 %vm2062_vm14, %v2872_v20 }
0x1820   :  { %2623 = vmatprep.subr.msk.mxu1 %vm2077_vm15, %v2872_v20 }
0x1821   :  { %2624 = vmatpush3.msk.msra.mxu1 %vm2061_vm3, %v2872_v20 }
0x1822   :  { %2625 = vmatprep.subr.msk.mxu1 %vm2076_vm4, %v2872_v20 }
0x1823   :  { %2626 = vmatpush3.msk.msra.mxu1 %vm2060_vm7, %v2872_v20 }
0x1824   :  { %2627 = vmatprep.subr.msk.mxu1 %vm2075_vm2, %v2872_v20 }
0x1825   :  { %2628 = vmatpush3.msk.msra.mxu1 %vm2059_vm8, %v2872_v20  ;;  %v2459_v20 = vld [vmem:[%s3441_s2 + $0x5] ss:$8 sm:$0x7] }
0x1826   :  { %v1262_v36 = vrot.slane %v2459_v20, %v1261_v7  ;;  %v1258_v52 = vrot.slane %v2459_v20, %v1257_v28  ;;  %v1254_v54 = vrot.slane %v2459_v20, %v1253_v34 }
0x18c2   :  { %v1335_v47 = vpop.f32.mrf.mxu1  ;;  %v1406_v48 = vpop.f32.mrf.mxu0 }
0x18c3   :  { %v1407_v57 = vadd.f32 %v1406_v48, %v1262_v36  ;;  %v1336_v1 = vadd.f32 %v1335_v47, %v1254_v54 }
0x18c4   :  { %v1337_v50 = vpop.f32.mrf.mxu1  ;;  %v2791_v11 = vpop.f32.mrf.mxu0 }
0x18c5   :  { %v1338_v62 = vadd.f32 %v1337_v50, %v1258_v52 }
0x18c6   :  { %v1517_v55 = vpop.f32.mrf.mxu1  ;;  %v1588_v56 = vpop.f32.mrf.mxu0 }
0x18c7   :  { %v1589_v58 = vadd.f32 %v1588_v56, %v1444_v49  ;;  %v1518_v59 = vadd.f32 %v1517_v55, %v1436_v51 }
0x18c8   :  { %v1519_v60 = vpop.f32.mrf.mxu1  ;;  %v2796_v61 = vpop.f32.mrf.mxu0 }
0x18c9   :  { %v2133_v63 = vmul.f32 %v1589_v58, %v1407_v57  ;;  %v1520_v5 = vadd.f32 %v1519_v60, %v1440_v53  ;;  %v2131_v3 = vmul.f32 %v1518_v59, %v1336_v1 }
0x18cb   :  { %v2132_v2 = vmul.f32 %v1520_v5, %v1338_v62  ;;  %2806 = vmatmul.mubr.msk.f32.vlgmr.msra.gmra.mxu0 %vm420_vm5, %v2133_v63 }
0x18cc   :  { %2816 = vmatprep.mubr.msk.f32.mxu0 %vm2869_vm0, %v2868_v0  ;;  %2809 = vmatpush3.msra.mxu0 %v2289_v4 }
0x18cd   :  { %2201 = vmatprep.mubr.f32.mxu1 %v2132_v2  ;;  %2810 = vmatprep.subr.mxu0 %v2868_v0 }
0x18ce   :  { %2202 = vmatmul.mubr.f32.vlgmr.msra.gmra.mxu1 %v2131_v3  ;;  %2811 = vmatpush3.msra.mxu0 %v2287_v6 }
0x18cf   :  { %2812 = vmatprep.subr.mxu0 %v2868_v0 }
0x18d0   :  { %2813 = vmatpush3.msra.mxu0 %v2285_v16 }
0x18d1   :  { %2814 = vmatprep.subr.mxu0 %v2868_v0 }
0x18d2   :  { %2815 = vmatpush3.msra.mxu0 %v2283_v8 }
0x18d3   :  { %2819 = vmatprep.subr.mxu0 %v2868_v0 }
0x198b   :  { %v2273_v10 = vpop.f32.mrf.mxu0 }
0x198d   :  { %v2807_v13 = vpop.f32.mrf.mxu0 }
0x198e   :  { %v2629_v17 = vpop.f32.mrf.mxu1 }
0x1990   :  { %v2630_v14 = vpop.f32.mrf.mxu1 }
0x1991   :  { %v2631_v18 = vadd.f32 %v2630_v14, %v2629_v17 }
0x1993   :  { %v2274_v15 = vadd.f32 %v2631_v18, %v2273_v10 }
0x1995   :  { %v2277_v19 = vmax.f32 %v2274_v15, 0.0 }
0x1997   :  { %2817 = vmatmul.mubr.msk.f32.vlgmr.msra.gmra.mxu0 %vm420_vm5, %v2277_v19 }
0x1998   :  { %2820 = vmatpush3.msra.mxu0 %v2375_v9  ;;  %2827 = vmatprep.mubr.msk.f32.mxu0 %vm2869_vm0, %v2868_v0  ;;  %vm2453_vm0 = vcmask 23552  }
0x1999   :  { %2821 = vmatprep.subr.mxu0 %v2868_v0 }
0x199a   :  { %2822 = vmatpush3.msra.mxu0 %v2373_v21 }
0x199b   :  { %2823 = vmatprep.subr.mxu0 %v2868_v0 }
0x199c   :  { %2824 = vmatpush3.msra.mxu0 %v2371_v22 }
0x199d   :  { %2825 = vmatprep.subr.mxu0 %v2868_v0 }
0x199e   :  { %2826 = vmatpush3.msra.mxu0 %v2369_v23 }
0x1a57   :  { %v2363_v26 = vpop.f32.mrf.mxu0 }
0x1a58   :  { %v2364_v27 = vadd.f32 %v2363_v26, %v24_v24 }
0x1a59   :  { %v2818_v29 = vpop.f32.mrf.mxu0 }
0x1a5a   :  { %v2367_v30 = vmax.f32 %v2364_v27, 0.0 }
0x1a5c   :  { %2828 = vmatmul.mubr.msk.f32.vlgmr.msra.gmra.mxu0 %vm420_vm5, %v2367_v30 }
0x1b1c   :  { %v2449_v32 = vpop.f32.mrf.mxu0 }
0x1b1d   :  { %v2450_v33 = vadd.f32 %v2449_v32, %v25_v31 }
0x1b1e   :  { %v2829_v35 = vpop.f32.mrf.mxu0 }
0x1b1f   :  { %2454 = vst.msk [vmem:[%s3443_s4] sm:$0xff] %vm2453_vm0, %v2450_v33 }

</bundles_post_ra>
